<compile_context>
chip_gen: v7x
topology: tpu7x:2x2x1
jax: 0.10.0
libtpu: 0.0.40
codegen_flags: <defaults>
</compile_context>

<pallas_src>
import functools

import jax
import jax.numpy as jnp
from jax.experimental import pallas as pl
from jax.experimental.pallas import tpu as pltpu


def _double_conv_kernel(x_ref, w1_ref, b1_ref, w2_ref, b2_ref, out_ref,
                        xp1, xp2, *, Nb, H):
    # Per grid step (Nb batched images):
    #   x_ref  : (Nb, H, W*Cin)           param_dtype; rows on sublanes, (x, ch) on lanes
    #   w1_ref : (3, W*Cin,  W*Cmid)      banded conv1 weights (BN1 scale folded in)
    #   b1_ref : (1, W*Cmid)   f32        BN1 shift, tiled across x positions
    #   w2_ref : (3, W*Cmid, W*Cout)      banded conv2 weights (BN2 scale folded in)
    #   b2_ref : (1, W*Cout)   f32        BN2 shift, tiled across x positions
    #   out_ref: (Nb, H, W*Cout)          param_dtype, lane-dense
    #   xp1    : VMEM (Nb*(H+2), W*Cin)   param_dtype; per-image zero-bordered input
    #   xp2    : VMEM (Nb*(H+2), W*Cmid)  param_dtype; per-image zero-bordered stage-1 act
    M = Nb * (H + 2) - 2          # GEMM rows; the 2*(Nb-1) seam rows are discarded

    # ---- stage 1: conv3x3 + folded BN1 + (Dropout eval = identity) + ReLU ----------
    z1 = jnp.zeros((1, xp1.shape[1]), xp1.dtype)
    for i in range(Nb):                               # zero borders + copy interiors
        base = i * (H + 2)
        xp1[base:base + 1, :] = z1
        xp1[base + H + 1:base + H + 2, :] = z1
        xp1[base + 1:base + H + 1, :] = x_ref[i]

    acc1 = b1_ref[...]                                # (1, W*Cmid) f32, broadcasts over M
    for ky in range(3):                               # 3 row taps -> 3 GEMMs, f32 acc
        acc1 = acc1 + jnp.dot(xp1[ky:ky + M, :], w1_ref[ky],
                              preferred_element_type=jnp.float32)
    h = jnp.maximum(acc1, 0.0)                        # (M, W*Cmid) f32

    # ---- stage 2: conv3x3 + folded BN2 + ReLU ---------------------------------------
    z2 = jnp.zeros((1, xp2.shape[1]), xp2.dtype)
    for i in range(Nb):
        base = i * (H + 2)
        xp2[base:base + 1, :] = z2
        xp2[base + H + 1:base + H + 2, :] = z2
        xp2[base + 1:base + H + 1, :] = h[base:base + H, :].astype(xp2.dtype)

    acc2 = b2_ref[...]
    for ky in range(3):
        acc2 = acc2 + jnp.dot(xp2[ky:ky + M, :], w2_ref[ky],
                              preferred_element_type=jnp.float32)
    y = jnp.maximum(acc2, 0.0)                        # (M, W*Cout) f32
    for i in range(Nb):
        base = i * (H + 2)
        out_ref[i] = y[base:base + H, :].astype(out_ref.dtype)


def _fused_double_conv(x_wide, w1b, b1t, w2b, b2t, *, H, W, Cin, Cmid, Cout, Nb):
    N = x_wide.shape[0]
    assert N % Nb == 0
    io_dtype = x_wide.dtype
    kernel = functools.partial(_double_conv_kernel, Nb=Nb, H=H)
    return pl.pallas_call(
        kernel,
        out_shape=jax.ShapeDtypeStruct((N, H, W * Cout), io_dtype),
        grid_spec=pltpu.PrefetchScalarGridSpec(
            num_scalar_prefetch=0,
            grid=(N // Nb,),
            in_specs=[
                pl.BlockSpec((Nb, H, W * Cin), lambda n: (n, 0, 0)),
                pl.BlockSpec((3, W * Cin, W * Cmid), lambda n: (0, 0, 0)),
                pl.BlockSpec((1, W * Cmid), lambda n: (0, 0)),
                pl.BlockSpec((3, W * Cmid, W * Cout), lambda n: (0, 0, 0)),
                pl.BlockSpec((1, W * Cout), lambda n: (0, 0)),
            ],
            out_specs=pl.BlockSpec((Nb, H, W * Cout), lambda n: (n, 0, 0)),
            scratch_shapes=[
                pltpu.VMEM((Nb * (H + 2), W * Cin), io_dtype),
                pltpu.VMEM((Nb * (H + 2), W * Cmid), io_dtype),
            ],
        ),
        compiler_params=pltpu.CompilerParams(
            dimension_semantics=("parallel",),
            vmem_limit_bytes=32 * 1024 * 1024,
        ),
    )(x_wide, w1b, b1t, w2b, b2t)


def _pick_nb(N, H, target_rows=256):
    """Largest divisor of N with Nb*(H+2) <= target_rows (MXU M target);
    keep the grid >= 2 steps when possible (megacore / v7x 2-TC sharding)."""
    nb = 1
    for cand in range(1, N + 1):
        if N % cand == 0 and cand * (H + 2) <= target_rows:
            nb = cand
    if N // nb < 2:
        for cand in range(nb - 1, 0, -1):
            if N % cand == 0 and N // cand >= 2:
                nb = cand
                break
    return nb


def _fold_bn(gamma, beta, running_mean, running_var, eps=1e-5):
    scale = gamma / jnp.sqrt(running_var + eps)
    shift = beta - running_mean * scale
    return scale, shift


def _banded_weight(w_oihw, scale, W, dtype):
    """Row-lowered banded conv weight (no side-padding columns), BN scale folded in.

    Returns Wb of shape (3, W*Cin, W*Cout) with
      Wb[ky, xin*Cin + ci, ox*Cout + co] = w[co, ci, ky, xin - ox + 1] * scale[co]
    when 0 <= xin - ox + 1 < 3, else 0 (this realizes the SAME x-padding).
    """
    Cout, Cin = w_oihw.shape[0], w_oihw.shape[1]
    w = (w_oihw * scale[:, None, None, None]).transpose(2, 3, 1, 0)  # (3,3,Cin,Cout) [ky,kx,ci,co]

    xin = jnp.arange(W)
    ox = jnp.arange(W)
    kx = xin[:, None] - ox[None, :] + 1                 # (W, W)
    valid = (kx >= 0) & (kx < 3)
    kx_c = jnp.clip(kx, 0, 2)

    wb = w[:, kx_c]                                     # (3, W, W, Cin, Cout)
    wb = jnp.where(valid[None, :, :, None, None], wb, 0.0)
    wb = wb.transpose(0, 1, 3, 2, 4)                    # (3, W, Cin, W, Cout)
    return wb.reshape(3, W * Cin, W * Cout).astype(dtype)


@functools.partial(jax.jit, static_argnames=("param_dtype",))
def double_conv_nhwc(x_nhwc, params, param_dtype=jnp.bfloat16):
    """Fused DoubleConv forward on NHWC input (no layout transposes; production path)."""
    N, H, W, Cin = x_nhwc.shape
    Cout = params["w1"].shape[0]
    Cmid = Cout

    scale1, shift1 = _fold_bn(params["gamma1"], params["beta1"],
                              params["mean1"], params["var1"])
    scale2, shift2 = _fold_bn(params["gamma2"], params["beta2"],
                              params["mean2"], params["var2"])

    w1b = _banded_weight(params["w1"], scale1, W, param_dtype)
    w2b = _banded_weight(params["w2"], scale2, W, param_dtype)
    b1t = jnp.tile(shift1, W).reshape(1, W * Cmid).astype(jnp.float32)
    b2t = jnp.tile(shift2, W).reshape(1, W * Cout).astype(jnp.float32)

    # NHWC -> (N, H, W*Cin): rows on sublanes, (x, channel) on lanes. Contiguous reshape.
    x_wide = x_nhwc.reshape(N, H, W * Cin).astype(param_dtype)

    nb = _pick_nb(N, H)
    y_wide = _fused_double_conv(x_wide, w1b, b1t, w2b, b2t,
                                H=H, W=W, Cin=Cin, Cmid=Cmid, Cout=Cout, Nb=nb)
    return y_wide.reshape(N, H, W, Cout)


def double_conv(x_nchw, params, param_dtype=jnp.float32):
    """PyTorch-layout (NCHW) compatibility wrapper around the NHWC kernel path."""
    x_nhwc = jnp.transpose(x_nchw, (0, 2, 3, 1))
    y_nhwc = double_conv_nhwc(x_nhwc, params, param_dtype=param_dtype)
    return jnp.transpose(y_nhwc, (0, 3, 1, 2))


def double_conv_reference(x_nchw, params, eps=1e-5):
    """Pure-JAX reference matching PyTorch eval-mode semantics."""
    def bn(x, g, b, m, v):
        g = g.reshape(1, -1, 1, 1); b = b.reshape(1, -1, 1, 1)
        m = m.reshape(1, -1, 1, 1); v = v.reshape(1, -1, 1, 1)
        return (x - m) / jnp.sqrt(v + eps) * g + b

    def conv(x, w):
        return jax.lax.conv_general_dilated(
            x, w, window_strides=(1, 1), padding=((1, 1), (1, 1)),
            dimension_numbers=("NCHW", "OIHW", "NCHW"))

    h = jax.nn.relu(bn(conv(x_nchw, params["w1"]), params["gamma1"],
                       params["beta1"], params["mean1"], params["var1"]))
    return jax.nn.relu(bn(conv(h, params["w2"]), params["gamma2"],
                          params["beta2"], params["mean2"], params["var2"]))


def make_params(key, in_channels, out_channels):
    ks = jax.random.split(key, 8)
    return {
        "w1": jax.random.normal(ks[0], (out_channels, in_channels, 3, 3), jnp.float32) * 0.1,
        "gamma1": jax.random.normal(ks[1], (out_channels,), jnp.float32) * 0.1 + 1.0,
        "beta1": jax.random.normal(ks[2], (out_channels,), jnp.float32) * 0.1,
        "mean1": jax.random.normal(ks[3], (out_channels,), jnp.float32) * 0.1,
        "var1": jax.random.uniform(ks[4], (out_channels,), jnp.float32, 0.5, 1.5),
        "w2": jax.random.normal(ks[5], (out_channels, out_channels, 3, 3), jnp.float32) * 0.1,
        "gamma2": jax.random.normal(ks[6], (out_channels,), jnp.float32) * 0.1 + 1.0,
        "beta2": jax.random.normal(ks[7], (out_channels,), jnp.float32) * 0.1,
        "mean2": jnp.zeros((out_channels,), jnp.float32),
        "var2": jnp.ones((out_channels,), jnp.float32),
    }


if __name__ == "__main__":
    key = jax.random.PRNGKey(0)
    k_x, k_p = jax.random.split(key)

    # batch=8 so the per-step image batching (Nb=4 -> grid of 2 steps) is exercised.
    N, Cin, Cout, H, W = 8, 4, 8, 16, 16
    x = jax.random.normal(k_x, (N, Cin, H, W), jnp.float32)
    params = make_params(k_p, Cin, Cout)

    ref = jax.block_until_ready(double_conv_reference(x, params))

    # f32 path (tight check) through the NCHW (PyTorch-layout) wrapper.
    out = jax.block_until_ready(double_conv(x, params, param_dtype=jnp.float32))
    assert out.shape == (N, Cout, H, W), out.shape
    err = float(jnp.max(jnp.abs(out - ref)))
    assert err < 1e-4, err

    # bf16 path: bf16 activations/weights/scratches/output, f32 accumulation (loose tol).
    out_bf16 = jax.block_until_ready(double_conv(x, params, param_dtype=jnp.bfloat16))
    err_bf16 = float(jnp.max(jnp.abs(out_bf16.astype(jnp.float32) - ref)))
    assert err_bf16 < 1e-1, err_bf16

    # NHWC entry point (no wrapper transposes) gives the same result.
    x_nhwc = jnp.transpose(x, (0, 2, 3, 1))
    out_nhwc = jax.block_until_ready(
        double_conv_nhwc(x_nhwc, params, param_dtype=jnp.float32))
    err_nhwc = float(jnp.max(jnp.abs(jnp.transpose(out_nhwc, (0, 3, 1, 2)) - ref)))
    assert err_nhwc < 1e-4, err_nhwc

    print("KERNEL_OK")
</pallas_src>

<mosaic_0001>
module attributes {stable_mosaic.version = 11 : i64} {
  func.func @_double_conv_kernel(%arg0: i32, %arg1: memref<4x16x64xf32, #tpu.memory_space<vmem>>, %arg2: memref<3x64x128xf32, #tpu.memory_space<vmem>>, %arg3: memref<1x128xf32, #tpu.memory_space<vmem>>, %arg4: memref<3x128x128xf32, #tpu.memory_space<vmem>>, %arg5: memref<1x128xf32, #tpu.memory_space<vmem>>, %arg6: memref<4x16x128xf32, #tpu.memory_space<vmem>>, %arg7: memref<72x64xf32, #tpu.memory_space<vmem>>, %arg8: memref<72x128xf32, #tpu.memory_space<vmem>>) attributes {dimension_semantics = [#tpu.dimension_semantics<parallel>], iteration_bounds = array<i64: 2>, scalar_prefetch = 0 : i64, scratch_operands = 2 : i64, tpu.core_type = #tpu.core_type<tc>, window_params = [{transform_indices = @transform_0, window_bounds = array<i64: 4, 16, 64>}, {pipeline_mode = #tpu.pipeline_mode<synchronous>, transform_indices = @transform_1, window_bounds = array<i64: 3, 64, 128>}, {pipeline_mode = #tpu.pipeline_mode<synchronous>, transform_indices = @transform_2, window_bounds = array<i64: 1, 128>}, {pipeline_mode = #tpu.pipeline_mode<synchronous>, transform_indices = @transform_3, window_bounds = array<i64: 3, 128, 128>}, {pipeline_mode = #tpu.pipeline_mode<synchronous>, transform_indices = @transform_4, window_bounds = array<i64: 1, 128>}, {transform_indices = @transform_5, window_bounds = array<i64: 4, 16, 128>}]} {
    %cst = arith.constant 0.000000e+00 : f32
    %0 = vector.broadcast %cst : f32 to vector<1x64xf32>
    %c0 = arith.constant 0 : index
    %c0_0 = arith.constant 0 : index
    %1 = vector.load %arg7[%c0, %c0_0] : memref<72x64xf32, #tpu.memory_space<vmem>>, vector<1x64xf32>
    tpu.vector_store %arg7[%c0, %c0_0], %0 {strides = array<i32>} : memref<72x64xf32, #tpu.memory_space<vmem>>, vector<1x64xf32>,
    %c17 = arith.constant 17 : index
    %c0_1 = arith.constant 0 : index
    %2 = vector.load %arg7[%c17, %c0_1] : memref<72x64xf32, #tpu.memory_space<vmem>>, vector<1x64xf32>
    tpu.vector_store %arg7[%c17, %c0_1], %0 {strides = array<i32>} : memref<72x64xf32, #tpu.memory_space<vmem>>, vector<1x64xf32>,
    %c0_2 = arith.constant 0 : index
    %c0_3 = arith.constant 0 : index
    %c0_4 = arith.constant 0 : index
    %3 = vector.load %arg1[%c0_2, %c0_3, %c0_4] : memref<4x16x64xf32, #tpu.memory_space<vmem>>, vector<1x16x64xf32>
    %4 = vector.shape_cast %3 : vector<1x16x64xf32> to vector<16x64xf32>
    %c1 = arith.constant 1 : index
    %c0_5 = arith.constant 0 : index
    %5 = vector.load %arg7[%c1, %c0_5] : memref<72x64xf32, #tpu.memory_space<vmem>>, vector<16x64xf32>
    tpu.vector_store %arg7[%c1, %c0_5], %4 {strides = array<i32>} : memref<72x64xf32, #tpu.memory_space<vmem>>, vector<16x64xf32>,
    %c18 = arith.constant 18 : index
    %c0_6 = arith.constant 0 : index
    %6 = vector.load %arg7[%c18, %c0_6] : memref<72x64xf32, #tpu.memory_space<vmem>>, vector<1x64xf32>
    tpu.vector_store %arg7[%c18, %c0_6], %0 {strides = array<i32>} : memref<72x64xf32, #tpu.memory_space<vmem>>, vector<1x64xf32>,
    %c35 = arith.constant 35 : index
    %c0_7 = arith.constant 0 : index
    %7 = vector.load %arg7[%c35, %c0_7] : memref<72x64xf32, #tpu.memory_space<vmem>>, vector<1x64xf32>
    tpu.vector_store %arg7[%c35, %c0_7], %0 {strides = array<i32>} : memref<72x64xf32, #tpu.memory_space<vmem>>, vector<1x64xf32>,
    %c1_8 = arith.constant 1 : index
    %c0_9 = arith.constant 0 : index
    %c0_10 = arith.constant 0 : index
    %8 = vector.load %arg1[%c1_8, %c0_9, %c0_10] : memref<4x16x64xf32, #tpu.memory_space<vmem>>, vector<1x16x64xf32>
    %9 = vector.shape_cast %8 : vector<1x16x64xf32> to vector<16x64xf32>
    %c19 = arith.constant 19 : index
    %c0_11 = arith.constant 0 : index
    %10 = vector.load %arg7[%c19, %c0_11] : memref<72x64xf32, #tpu.memory_space<vmem>>, vector<16x64xf32>
    tpu.vector_store %arg7[%c19, %c0_11], %9 {strides = array<i32>} : memref<72x64xf32, #tpu.memory_space<vmem>>, vector<16x64xf32>,
    %c36 = arith.constant 36 : index
    %c0_12 = arith.constant 0 : index
    %11 = vector.load %arg7[%c36, %c0_12] : memref<72x64xf32, #tpu.memory_space<vmem>>, vector<1x64xf32>
    tpu.vector_store %arg7[%c36, %c0_12], %0 {strides = array<i32>} : memref<72x64xf32, #tpu.memory_space<vmem>>, vector<1x64xf32>,
    %c53 = arith.constant 53 : index
    %c0_13 = arith.constant 0 : index
    %12 = vector.load %arg7[%c53, %c0_13] : memref<72x64xf32, #tpu.memory_space<vmem>>, vector<1x64xf32>
    tpu.vector_store %arg7[%c53, %c0_13], %0 {strides = array<i32>} : memref<72x64xf32, #tpu.memory_space<vmem>>, vector<1x64xf32>,
    %c2 = arith.constant 2 : index
    %c0_14 = arith.constant 0 : index
    %c0_15 = arith.constant 0 : index
    %13 = vector.load %arg1[%c2, %c0_14, %c0_15] : memref<4x16x64xf32, #tpu.memory_space<vmem>>, vector<1x16x64xf32>
    %14 = vector.shape_cast %13 : vector<1x16x64xf32> to vector<16x64xf32>
    %c37 = arith.constant 37 : index
    %c0_16 = arith.constant 0 : index
    %15 = vector.load %arg7[%c37, %c0_16] : memref<72x64xf32, #tpu.memory_space<vmem>>, vector<16x64xf32>
    tpu.vector_store %arg7[%c37, %c0_16], %14 {strides = array<i32>} : memref<72x64xf32, #tpu.memory_space<vmem>>, vector<16x64xf32>,
    %c54 = arith.constant 54 : index
    %c0_17 = arith.constant 0 : index
    %16 = vector.load %arg7[%c54, %c0_17] : memref<72x64xf32, #tpu.memory_space<vmem>>, vector<1x64xf32>
    tpu.vector_store %arg7[%c54, %c0_17], %0 {strides = array<i32>} : memref<72x64xf32, #tpu.memory_space<vmem>>, vector<1x64xf32>,
    %c71 = arith.constant 71 : index
    %c0_18 = arith.constant 0 : index
    %17 = vector.load %arg7[%c71, %c0_18] : memref<72x64xf32, #tpu.memory_space<vmem>>, vector<1x64xf32>
    tpu.vector_store %arg7[%c71, %c0_18], %0 {strides = array<i32>} : memref<72x64xf32, #tpu.memory_space<vmem>>, vector<1x64xf32>,
    %c3 = arith.constant 3 : index
    %c0_19 = arith.constant 0 : index
    %c0_20 = arith.constant 0 : index
    %18 = vector.load %arg1[%c3, %c0_19, %c0_20] : memref<4x16x64xf32, #tpu.memory_space<vmem>>, vector<1x16x64xf32>
    %19 = vector.shape_cast %18 : vector<1x16x64xf32> to vector<16x64xf32>
    %c55 = arith.constant 55 : index
    %c0_21 = arith.constant 0 : index
    %20 = vector.load %arg7[%c55, %c0_21] : memref<72x64xf32, #tpu.memory_space<vmem>>, vector<16x64xf32>
    tpu.vector_store %arg7[%c55, %c0_21], %19 {strides = array<i32>} : memref<72x64xf32, #tpu.memory_space<vmem>>, vector<16x64xf32>,
    %c0_22 = arith.constant 0 : index
    %c0_23 = arith.constant 0 : index
    %21 = vector.load %arg3[%c0_22, %c0_23] : memref<1x128xf32, #tpu.memory_space<vmem>>, vector<1x128xf32>
    %c0_24 = arith.constant 0 : index
    %c0_25 = arith.constant 0 : index
    %22 = vector.load %arg7[%c0_24, %c0_25] : memref<72x64xf32, #tpu.memory_space<vmem>>, vector<70x64xf32>
    %c0_26 = arith.constant 0 : index
    %c0_27 = arith.constant 0 : index
    %c0_28 = arith.constant 0 : index
    %23 = vector.load %arg2[%c0_26, %c0_27, %c0_28] : memref<3x64x128xf32, #tpu.memory_space<vmem>>, vector<1x64x128xf32>
    %24 = vector.shape_cast %23 : vector<1x64x128xf32> to vector<64x128xf32>
    %cst_29 = arith.constant dense<0.000000e+00> : vector<70x128xf32>
    %25 = tpu.matmul %22, %24, %cst_29 {dimension_numbers = #tpu.dot_dimension_numbers<[1], [0], [0], [1], [0, 0, 1, 1], [], []>} : vector<70x64xf32>, vector<64x128xf32>, vector<70x128xf32> -> vector<70x128xf32>
    %26 = vector.broadcast %21 : vector<1x128xf32> to vector<70x128xf32>
    %27 = arith.addf %26, %25 : vector<70x128xf32>
    %c1_30 = arith.constant 1 : index
    %c0_31 = arith.constant 0 : index
    %28 = vector.load %arg7[%c1_30, %c0_31] : memref<72x64xf32, #tpu.memory_space<vmem>>, vector<70x64xf32>
    %c1_32 = arith.constant 1 : index
    %c0_33 = arith.constant 0 : index
    %c0_34 = arith.constant 0 : index
    %29 = vector.load %arg2[%c1_32, %c0_33, %c0_34] : memref<3x64x128xf32, #tpu.memory_space<vmem>>, vector<1x64x128xf32>
    %30 = vector.shape_cast %29 : vector<1x64x128xf32> to vector<64x128xf32>
    %cst_35 = arith.constant dense<0.000000e+00> : vector<70x128xf32>
    %31 = tpu.matmul %28, %30, %cst_35 {dimension_numbers = #tpu.dot_dimension_numbers<[1], [0], [0], [1], [0, 0, 1, 1], [], []>} : vector<70x64xf32>, vector<64x128xf32>, vector<70x128xf32> -> vector<70x128xf32>
    %32 = arith.addf %27, %31 : vector<70x128xf32>
    %c2_36 = arith.constant 2 : index
    %c0_37 = arith.constant 0 : index
    %33 = vector.load %arg7[%c2_36, %c0_37] : memref<72x64xf32, #tpu.memory_space<vmem>>, vector<70x64xf32>
    %c2_38 = arith.constant 2 : index
    %c0_39 = arith.constant 0 : index
    %c0_40 = arith.constant 0 : index
    %34 = vector.load %arg2[%c2_38, %c0_39, %c0_40] : memref<3x64x128xf32, #tpu.memory_space<vmem>>, vector<1x64x128xf32>
    %35 = vector.shape_cast %34 : vector<1x64x128xf32> to vector<64x128xf32>
    %cst_41 = arith.constant dense<0.000000e+00> : vector<70x128xf32>
    %36 = tpu.matmul %33, %35, %cst_41 {dimension_numbers = #tpu.dot_dimension_numbers<[1], [0], [0], [1], [0, 0, 1, 1], [], []>} : vector<70x64xf32>, vector<64x128xf32>, vector<70x128xf32> -> vector<70x128xf32>
    %37 = arith.addf %32, %36 : vector<70x128xf32>
    %cst_42 = arith.constant 0.000000e+00 : f32
    %38 = vector.broadcast %cst_42 : f32 to vector<70x128xf32>
    %39 = arith.maximumf %37, %38 : vector<70x128xf32>
    %cst_43 = arith.constant 0.000000e+00 : f32
    %40 = vector.broadcast %cst_43 : f32 to vector<1x128xf32>
    %c0_44 = arith.constant 0 : index
    %c0_45 = arith.constant 0 : index
    %41 = vector.load %arg8[%c0_44, %c0_45] : memref<72x128xf32, #tpu.memory_space<vmem>>, vector<1x128xf32>
    tpu.vector_store %arg8[%c0_44, %c0_45], %40 {strides = array<i32>} : memref<72x128xf32, #tpu.memory_space<vmem>>, vector<1x128xf32>,
    %c17_46 = arith.constant 17 : index
    %c0_47 = arith.constant 0 : index
    %42 = vector.load %arg8[%c17_46, %c0_47] : memref<72x128xf32, #tpu.memory_space<vmem>>, vector<1x128xf32>
    tpu.vector_store %arg8[%c17_46, %c0_47], %40 {strides = array<i32>} : memref<72x128xf32, #tpu.memory_space<vmem>>, vector<1x128xf32>,
    %43 = vector.extract_strided_slice %39 {offsets = [0, 0], sizes = [16, 128], strides = [1, 1]} : vector<70x128xf32> to vector<16x128xf32>
    %c1_48 = arith.constant 1 : index
    %c0_49 = arith.constant 0 : index
    %44 = vector.load %arg8[%c1_48, %c0_49] : memref<72x128xf32, #tpu.memory_space<vmem>>, vector<16x128xf32>
    tpu.vector_store %arg8[%c1_48, %c0_49], %43 {strides = array<i32>} : memref<72x128xf32, #tpu.memory_space<vmem>>, vector<16x128xf32>,
    %c18_50 = arith.constant 18 : index
    %c0_51 = arith.constant 0 : index
    %45 = vector.load %arg8[%c18_50, %c0_51] : memref<72x128xf32, #tpu.memory_space<vmem>>, vector<1x128xf32>
    tpu.vector_store %arg8[%c18_50, %c0_51], %40 {strides = array<i32>} : memref<72x128xf32, #tpu.memory_space<vmem>>, vector<1x128xf32>,
    %c35_52 = arith.constant 35 : index
    %c0_53 = arith.constant 0 : index
    %46 = vector.load %arg8[%c35_52, %c0_53] : memref<72x128xf32, #tpu.memory_space<vmem>>, vector<1x128xf32>
    tpu.vector_store %arg8[%c35_52, %c0_53], %40 {strides = array<i32>} : memref<72x128xf32, #tpu.memory_space<vmem>>, vector<1x128xf32>,
    %47 = vector.extract_strided_slice %39 {offsets = [18, 0], sizes = [16, 128], strides = [1, 1]} : vector<70x128xf32> to vector<16x128xf32>
    %c19_54 = arith.constant 19 : index
    %c0_55 = arith.constant 0 : index
    %48 = vector.load %arg8[%c19_54, %c0_55] : memref<72x128xf32, #tpu.memory_space<vmem>>, vector<16x128xf32>
    tpu.vector_store %arg8[%c19_54, %c0_55], %47 {strides = array<i32>} : memref<72x128xf32, #tpu.memory_space<vmem>>, vector<16x128xf32>,
    %c36_56 = arith.constant 36 : index
    %c0_57 = arith.constant 0 : index
    %49 = vector.load %arg8[%c36_56, %c0_57] : memref<72x128xf32, #tpu.memory_space<vmem>>, vector<1x128xf32>
    tpu.vector_store %arg8[%c36_56, %c0_57], %40 {strides = array<i32>} : memref<72x128xf32, #tpu.memory_space<vmem>>, vector<1x128xf32>,
    %c53_58 = arith.constant 53 : index
    %c0_59 = arith.constant 0 : index
    %50 = vector.load %arg8[%c53_58, %c0_59] : memref<72x128xf32, #tpu.memory_space<vmem>>, vector<1x128xf32>
    tpu.vector_store %arg8[%c53_58, %c0_59], %40 {strides = array<i32>} : memref<72x128xf32, #tpu.memory_space<vmem>>, vector<1x128xf32>,
    %51 = vector.extract_strided_slice %39 {offsets = [36, 0], sizes = [16, 128], strides = [1, 1]} : vector<70x128xf32> to vector<16x128xf32>
    %c37_60 = arith.constant 37 : index
    %c0_61 = arith.constant 0 : index
    %52 = vector.load %arg8[%c37_60, %c0_61] : memref<72x128xf32, #tpu.memory_space<vmem>>, vector<16x128xf32>
    tpu.vector_store %arg8[%c37_60, %c0_61], %51 {strides = array<i32>} : memref<72x128xf32, #tpu.memory_space<vmem>>, vector<16x128xf32>,
    %c54_62 = arith.constant 54 : index
    %c0_63 = arith.constant 0 : index
    %53 = vector.load %arg8[%c54_62, %c0_63] : memref<72x128xf32, #tpu.memory_space<vmem>>, vector<1x128xf32>
    tpu.vector_store %arg8[%c54_62, %c0_63], %40 {strides = array<i32>} : memref<72x128xf32, #tpu.memory_space<vmem>>, vector<1x128xf32>,
    %c71_64 = arith.constant 71 : index
    %c0_65 = arith.constant 0 : index
    %54 = vector.load %arg8[%c71_64, %c0_65] : memref<72x128xf32, #tpu.memory_space<vmem>>, vector<1x128xf32>
    tpu.vector_store %arg8[%c71_64, %c0_65], %40 {strides = array<i32>} : memref<72x128xf32, #tpu.memory_space<vmem>>, vector<1x128xf32>,
    %55 = vector.extract_strided_slice %39 {offsets = [54, 0], sizes = [16, 128], strides = [1, 1]} : vector<70x128xf32> to vector<16x128xf32>
    %c55_66 = arith.constant 55 : index
    %c0_67 = arith.constant 0 : index
    %56 = vector.load %arg8[%c55_66, %c0_67] : memref<72x128xf32, #tpu.memory_space<vmem>>, vector<16x128xf32>
    tpu.vector_store %arg8[%c55_66, %c0_67], %55 {strides = array<i32>} : memref<72x128xf32, #tpu.memory_space<vmem>>, vector<16x128xf32>,
    %c0_68 = arith.constant 0 : index
    %c0_69 = arith.constant 0 : index
    %57 = vector.load %arg5[%c0_68, %c0_69] : memref<1x128xf32, #tpu.memory_space<vmem>>, vector<1x128xf32>
    %c0_70 = arith.constant 0 : index
    %c0_71 = arith.constant 0 : index
    %58 = vector.load %arg8[%c0_70, %c0_71] : memref<72x128xf32, #tpu.memory_space<vmem>>, vector<70x128xf32>
    %c0_72 = arith.constant 0 : index
    %c0_73 = arith.constant 0 : index
    %c0_74 = arith.constant 0 : index
    %59 = vector.load %arg4[%c0_72, %c0_73, %c0_74] : memref<3x128x128xf32, #tpu.memory_space<vmem>>, vector<1x128x128xf32>
    %60 = vector.shape_cast %59 : vector<1x128x128xf32> to vector<128x128xf32>
    %cst_75 = arith.constant dense<0.000000e+00> : vector<70x128xf32>
    %61 = tpu.matmul %58, %60, %cst_75 {dimension_numbers = #tpu.dot_dimension_numbers<[1], [0], [0], [1], [0, 0, 1, 1], [], []>} : vector<70x128xf32>, vector<128x128xf32>, vector<70x128xf32> -> vector<70x128xf32>
    %62 = vector.broadcast %57 : vector<1x128xf32> to vector<70x128xf32>
    %63 = arith.addf %62, %61 : vector<70x128xf32>
    %c1_76 = arith.constant 1 : index
    %c0_77 = arith.constant 0 : index
    %64 = vector.load %arg8[%c1_76, %c0_77] : memref<72x128xf32, #tpu.memory_space<vmem>>, vector<70x128xf32>
    %c1_78 = arith.constant 1 : index
    %c0_79 = arith.constant 0 : index
    %c0_80 = arith.constant 0 : index
    %65 = vector.load %arg4[%c1_78, %c0_79, %c0_80] : memref<3x128x128xf32, #tpu.memory_space<vmem>>, vector<1x128x128xf32>
    %66 = vector.shape_cast %65 : vector<1x128x128xf32> to vector<128x128xf32>
    %cst_81 = arith.constant dense<0.000000e+00> : vector<70x128xf32>
    %67 = tpu.matmul %64, %66, %cst_81 {dimension_numbers = #tpu.dot_dimension_numbers<[1], [0], [0], [1], [0, 0, 1, 1], [], []>} : vector<70x128xf32>, vector<128x128xf32>, vector<70x128xf32> -> vector<70x128xf32>
    %68 = arith.addf %63, %67 : vector<70x128xf32>
    %c2_82 = arith.constant 2 : index
    %c0_83 = arith.constant 0 : index
    %69 = vector.load %arg8[%c2_82, %c0_83] : memref<72x128xf32, #tpu.memory_space<vmem>>, vector<70x128xf32>
    %c2_84 = arith.constant 2 : index
    %c0_85 = arith.constant 0 : index
    %c0_86 = arith.constant 0 : index
    %70 = vector.load %arg4[%c2_84, %c0_85, %c0_86] : memref<3x128x128xf32, #tpu.memory_space<vmem>>, vector<1x128x128xf32>
    %71 = vector.shape_cast %70 : vector<1x128x128xf32> to vector<128x128xf32>
    %cst_87 = arith.constant dense<0.000000e+00> : vector<70x128xf32>
    %72 = tpu.matmul %69, %71, %cst_87 {dimension_numbers = #tpu.dot_dimension_numbers<[1], [0], [0], [1], [0, 0, 1, 1], [], []>} : vector<70x128xf32>, vector<128x128xf32>, vector<70x128xf32> -> vector<70x128xf32>
    %73 = arith.addf %68, %72 : vector<70x128xf32>
    %cst_88 = arith.constant 0.000000e+00 : f32
    %74 = vector.broadcast %cst_88 : f32 to vector<70x128xf32>
    %75 = arith.maximumf %73, %74 : vector<70x128xf32>
    %76 = vector.extract_strided_slice %75 {offsets = [0, 0], sizes = [16, 128], strides = [1, 1]} : vector<70x128xf32> to vector<16x128xf32>
    %c0_89 = arith.constant 0 : index
    %c0_90 = arith.constant 0 : index
    %c0_91 = arith.constant 0 : index
    %77 = vector.load %arg6[%c0_89, %c0_90, %c0_91] : memref<4x16x128xf32, #tpu.memory_space<vmem>>, vector<1x16x128xf32>
    %78 = vector.shape_cast %77 : vector<1x16x128xf32> to vector<16x128xf32>
    %79 = vector.shape_cast %76 : vector<16x128xf32> to vector<1x16x128xf32>
    tpu.vector_store %arg6[%c0_89, %c0_90, %c0_91], %79 {strides = array<i32>} : memref<4x16x128xf32, #tpu.memory_space<vmem>>, vector<1x16x128xf32>,
    %80 = vector.extract_strided_slice %75 {offsets = [18, 0], sizes = [16, 128], strides = [1, 1]} : vector<70x128xf32> to vector<16x128xf32>
    %c1_92 = arith.constant 1 : index
    %c0_93 = arith.constant 0 : index
    %c0_94 = arith.constant 0 : index
    %81 = vector.load %arg6[%c1_92, %c0_93, %c0_94] : memref<4x16x128xf32, #tpu.memory_space<vmem>>, vector<1x16x128xf32>
    %82 = vector.shape_cast %81 : vector<1x16x128xf32> to vector<16x128xf32>
    %83 = vector.shape_cast %80 : vector<16x128xf32> to vector<1x16x128xf32>
    tpu.vector_store %arg6[%c1_92, %c0_93, %c0_94], %83 {strides = array<i32>} : memref<4x16x128xf32, #tpu.memory_space<vmem>>, vector<1x16x128xf32>,
    %84 = vector.extract_strided_slice %75 {offsets = [36, 0], sizes = [16, 128], strides = [1, 1]} : vector<70x128xf32> to vector<16x128xf32>
    %c2_95 = arith.constant 2 : index
    %c0_96 = arith.constant 0 : index
    %c0_97 = arith.constant 0 : index
    %85 = vector.load %arg6[%c2_95, %c0_96, %c0_97] : memref<4x16x128xf32, #tpu.memory_space<vmem>>, vector<1x16x128xf32>
    %86 = vector.shape_cast %85 : vector<1x16x128xf32> to vector<16x128xf32>
    %87 = vector.shape_cast %84 : vector<16x128xf32> to vector<1x16x128xf32>
    tpu.vector_store %arg6[%c2_95, %c0_96, %c0_97], %87 {strides = array<i32>} : memref<4x16x128xf32, #tpu.memory_space<vmem>>, vector<1x16x128xf32>,
    %88 = vector.extract_strided_slice %75 {offsets = [54, 0], sizes = [16, 128], strides = [1, 1]} : vector<70x128xf32> to vector<16x128xf32>
    %c3_98 = arith.constant 3 : index
    %c0_99 = arith.constant 0 : index
    %c0_100 = arith.constant 0 : index
    %89 = vector.load %arg6[%c3_98, %c0_99, %c0_100] : memref<4x16x128xf32, #tpu.memory_space<vmem>>, vector<1x16x128xf32>
    %90 = vector.shape_cast %89 : vector<1x16x128xf32> to vector<16x128xf32>
    %91 = vector.shape_cast %88 : vector<16x128xf32> to vector<1x16x128xf32>
    tpu.vector_store %arg6[%c3_98, %c0_99, %c0_100], %91 {strides = array<i32>} : memref<4x16x128xf32, #tpu.memory_space<vmem>>, vector<1x16x128xf32>,
    return
  }
  func.func @transform_0(%arg0: i32) -> (i32, i32, i32) {
    %c0_i32 = arith.constant 0 : i32
    %c0_i32_0 = arith.constant 0 : i32
    %c0_i32_1 = arith.constant 0 : i32
    return %arg0, %c0_i32, %c0_i32_0 : i32, i32, i32
  }
  func.func @transform_1(%arg0: i32) -> (i32, i32, i32) {
    %c0_i32 = arith.constant 0 : i32
    %c0_i32_0 = arith.constant 0 : i32
    %c0_i32_1 = arith.constant 0 : i32
    %c0_i32_2 = arith.constant 0 : i32
    return %c0_i32, %c0_i32_0, %c0_i32_1 : i32, i32, i32
  }
  func.func @transform_2(%arg0: i32) -> (i32, i32) {
    %c0_i32 = arith.constant 0 : i32
    %c0_i32_0 = arith.constant 0 : i32
    %c0_i32_1 = arith.constant 0 : i32
    return %c0_i32, %c0_i32_0 : i32, i32
  }
  func.func @transform_3(%arg0: i32) -> (i32, i32, i32) {
    %c0_i32 = arith.constant 0 : i32
    %c0_i32_0 = arith.constant 0 : i32
    %c0_i32_1 = arith.constant 0 : i32
    %c0_i32_2 = arith.constant 0 : i32
    return %c0_i32, %c0_i32_0, %c0_i32_1 : i32, i32, i32
  }
  func.func @transform_4(%arg0: i32) -> (i32, i32) {
    %c0_i32 = arith.constant 0 : i32
    %c0_i32_0 = arith.constant 0 : i32
    %c0_i32_1 = arith.constant 0 : i32
    return %c0_i32, %c0_i32_0 : i32, i32
  }
  func.func @transform_5(%arg0: i32) -> (i32, i32, i32) {
    %c0_i32 = arith.constant 0 : i32
    %c0_i32_0 = arith.constant 0 : i32
    %c0_i32_1 = arith.constant 0 : i32
    return %arg0, %c0_i32, %c0_i32_0 : i32, i32, i32
  }
}

</mosaic_0001>

<bundles_post_ra>
// kernel: tile.13
= control target key start
LH: loop header
LB: loop body
LE: loop exit
PB: predicated region body
PF: predicated region fallthrough
CT: control target
= control target key end

     0   :  { %s28_s0 = inlined_call_operand.vmem [shape: f32[8], index: 0, kind: input, shape index: {}]   ;;  %s29_s1 = inlined_call_operand.vmem [shape: f32[16,8], index: 1, kind: output, shape index: {}]  }
   0x1   :  { %v4_v0 = vld [vmem:[%s28_s0] ss:$0 sm:$0xff] }
   0x2   :  { %5 = vst [vmem:[%s29_s1] sm:$0xff] %v4_v0  ;;  %8 = vst [vmem:[%s29_s1 + $0x8] sm:$0xff] %v4_v0 }

// kernel: tile.14
= control target key start
LH: loop header
LB: loop body
LE: loop exit
PB: predicated region body
PF: predicated region fallthrough
CT: control target
= control target key end

     0   :  { %s131_s10 = smov 120   ;;  %s132_s11 = smov 104   ;;  %vm3_vm0 = vcmask 64512   ;;  %vm9_vm1 = vcmask 1048512   ;;  %vm15_vm2 = vcmask 982912   ;;  %vm21_vm3 = vcmask 917312   ;;  %s207_s0 = inlined_call_operand.vmem [shape: f32[16,8], index: 0, kind: input, shape index: {}]   ;;  %s208_s1 = inlined_call_operand.vmem [shape: f32[1,128], index: 1, kind: output, shape index: {}]  }
   0x1   :  { %v101_v0 = vld [vmem:[%s207_s0 + $0xf] sm:$0x1]   ;;  %v103_v1 = vld [vmem:[%s207_s0 + $0xd] sm:$0x1]   ;;  %v102_v2 = vld [vmem:[%s207_s0 + $0xe] sm:$0x1]  }
   0x2   :  { %7 = vrot.lane.b32.xlu0 %v101_v0, %s131_s10  ;;  %19 = vrot.lane.b32.xlu1 %v103_v1, %s132_s11  ;;  %v104_v3 = vld [vmem:[%s207_s0 + $0xc] sm:$0x1]   ;;  %s133_s16 = smov 112   ;;  %s134_s17 = smov 96   ;;  %v105_v4 = vld [vmem:[%s207_s0 + $0xb] sm:$0x1]  }
   0x3   :  { %v106_v5 = vld [vmem:[%s207_s0 + $0xa] sm:$0x1]   ;;  %v2_v6 = vld [vmem:[%s207_s0] sm:$0x1]   ;;  %s135_s24 = smov 88   ;;  %s136_s25 = smov 80  }
   0x4   :  { %4 = vst.msk [vmem:[#allocation0] sm:$0x1] %vm3_vm0, %v2_v6   ;;  %v107_v7 = vld [vmem:[%s207_s0 + $0x9] sm:$0x1]   ;;  %v108_v8 = vld [vmem:[%s207_s0 + $0x8] sm:$0x1]  }
   0x5   :  { %s137_s30 = smov 72   ;;  %s138_s2 = smov 64   ;;  %v109_v9 = vld [vmem:[%s207_s0 + $0x7] sm:$0x1]   ;;  %v110_v10 = vld [vmem:[%s207_s0 + $0x6] sm:$0x1]  }
   0x6   :  { %13 = vrot.lane.b32.xlu0 %v102_v2, %s133_s16  ;;  %25 = vrot.lane.b32.xlu1 %v104_v3, %s134_s17  ;;  %s139_s7 = smov 56   ;;  %s140_s8 = smov 48   ;;  %v111_v11 = vld [vmem:[%s207_s0 + $0x5] sm:$0x1]   ;;  %v112_v12 = vld [vmem:[%s207_s0 + $0x4] sm:$0x1]  }
   0x7   :  { %s141_s13 = smov 40   ;;  %s142_s14 = smov 32   ;;  %v113_v13 = vld [vmem:[%s207_s0 + $0x3] sm:$0x1]   ;;  %v114_v14 = vld [vmem:[%s207_s0 + $0x2] sm:$0x1]  }
   0x8   :  { %s143_s19 = smov 24   ;;  %s144_s20 = smov 16   ;;  %v115_v15 = vld [vmem:[%s207_s0 + $0x1] sm:$0x1]   ;;  %vm27_vm4 = vcmask 851712   ;;  %vm33_vm5 = vcmask 786112  }
   0x9   :  { %s145_s0 = smov 8   ;;  %vm39_vm6 = vcmask 720512   ;;  %vm45_vm7 = vcmask 654912   ;;  %vm51_vm8 = vcmask 589312   ;;  %vm57_vm9 = vcmask 523712  }
   0xa   :  { %31 = vrot.lane.b32.xlu0 %v105_v4, %s135_s24  ;;  %37 = vrot.lane.b32.xlu1 %v106_v5, %s136_s25  ;;  %vm63_vm10 = vcmask 458112   ;;  %vm69_vm11 = vcmask 392512   ;;  %vm75_vm12 = vcmask 326912   ;;  %vm81_vm13 = vcmask 261312  }
   0xb   :  { %vm87_vm14 = vcmask 195712   ;;  %vm93_vm15 = vcmask 130112  }
   0xe   :  { %43 = vrot.lane.b32.xlu0 %v107_v7, %s137_s30  ;;  %49 = vrot.lane.b32.xlu1 %v108_v8, %s138_s2 }
  0x12   :  { %55 = vrot.lane.b32.xlu0 %v109_v9, %s139_s7  ;;  %61 = vrot.lane.b32.xlu1 %v110_v10, %s140_s8 }
  0x16   :  { %67 = vrot.lane.b32.xlu0 %v111_v11, %s141_s13  ;;  %73 = vrot.lane.b32.xlu1 %v112_v12, %s142_s14 }
  0x1a   :  { %79 = vrot.lane.b32.xlu0 %v113_v13, %s143_s19  ;;  %85 = vrot.lane.b32.xlu1 %v114_v14, %s144_s20 }
  0x1e   :  { %91 = vrot.lane.b32.xlu0 %v115_v15, %s145_s0 }
  0x74   :  { %v8_v16 = vpop.permute.xlu0 %7   ;;  %v20_v17 = vpop.permute.xlu1 %19  }
  0x75   :  { %10 = vst.msk [vmem:[#allocation0] sm:$0x1] %vm9_vm1, %v8_v16  }
  0x78   :  { %v14_v18 = vpop.permute.xlu0 %13   ;;  %v26_v19 = vpop.permute.xlu1 %25  }
  0x79   :  { %16 = vst.msk [vmem:[#allocation0] sm:$0x1] %vm15_vm2, %v14_v18  }
  0x7a   :  { %22 = vst.msk [vmem:[#allocation0] sm:$0x1] %vm21_vm3, %v20_v17  }
  0x7b   :  { %28 = vst.msk [vmem:[#allocation0] sm:$0x1] %vm27_vm4, %v26_v19  }
  0x7c   :  { %v32_v20 = vpop.permute.xlu0 %31   ;;  %v38_v21 = vpop.permute.xlu1 %37  }
  0x7d   :  { %34 = vst.msk [vmem:[#allocation0] sm:$0x1] %vm33_vm5, %v32_v20  }
  0x7e   :  { %40 = vst.msk [vmem:[#allocation0] sm:$0x1] %vm39_vm6, %v38_v21  }
  0x80   :  { %v44_v22 = vpop.permute.xlu0 %43   ;;  %v50_v23 = vpop.permute.xlu1 %49  }
  0x81   :  { %46 = vst.msk [vmem:[#allocation0] sm:$0x1] %vm45_vm7, %v44_v22  }
  0x82   :  { %52 = vst.msk [vmem:[#allocation0] sm:$0x1] %vm51_vm8, %v50_v23  }
  0x84   :  { %v56_v24 = vpop.permute.xlu0 %55   ;;  %v62_v25 = vpop.permute.xlu1 %61  }
  0x85   :  { %58 = vst.msk [vmem:[#allocation0] sm:$0x1] %vm57_vm9, %v56_v24  }
  0x86   :  { %64 = vst.msk [vmem:[#allocation0] sm:$0x1] %vm63_vm10, %v62_v25  }
  0x88   :  { %v68_v26 = vpop.permute.xlu0 %67   ;;  %v74_v27 = vpop.permute.xlu1 %73  }
  0x89   :  { %70 = vst.msk [vmem:[#allocation0] sm:$0x1] %vm69_vm11, %v68_v26  }
  0x8a   :  { %76 = vst.msk [vmem:[#allocation0] sm:$0x1] %vm75_vm12, %v74_v27  }
  0x8c   :  { %v80_v28 = vpop.permute.xlu0 %79   ;;  %v86_v29 = vpop.permute.xlu1 %85  }
  0x8d   :  { %82 = vst.msk [vmem:[#allocation0] sm:$0x1] %vm81_vm13, %v80_v28  }
  0x8e   :  { %88 = vst.msk [vmem:[#allocation0] sm:$0x1] %vm87_vm14, %v86_v29  }
  0x90   :  { %v92_v30 = vpop.permute.xlu0 %91  }
  0x91   :  { %94 = vst.msk [vmem:[#allocation0] sm:$0x1] %vm93_vm15, %v92_v30  }
  0x98   :  { %v98_v31 = vld [vmem:[#allocation0] sm:$0x1] }
  0x99   :  { %100 = vst [vmem:[%s208_s1] sm:$0x1] %v98_v31 }

// kernel: double_conv_nhwc.1
= control target key start
LH: loop header
LB: loop body
LE: loop exit
PB: predicated region body
PF: predicated region fallthrough
CT: control target
= control target key end

     0   :  { %s2113_s18 = smov 0   ;;  %s2650_s0 = inlined_call_operand.vmem [shape: f32[8,16,64], index: 0, kind: input, shape index: {}]   ;;  %s2651_s1 = inlined_call_operand.vmem [shape: f32[3,64,128], index: 1, kind: input, shape index: {}]   ;;  %s2652_s2 = inlined_call_operand.vmem [shape: f32[1,128], index: 2, kind: input, shape index: {}]   ;;  %s2653_s3 = inlined_call_operand.vmem [shape: f32[3,128,128], index: 3, kind: input, shape index: {}]   ;;  %s2654_s4 = inlined_call_operand.vmem [shape: f32[1,128], index: 4, kind: input, shape index: {}]   ;;  %s2655_s5 = inlined_call_operand.vmem [shape: f32[8,16,128], index: 5, kind: output, shape index: {}]  }
   0x1 LB: > { %s1310_s19 = sadd.s32 4294967295, %s2078_s18   ;;  %p1314_p0 = scmp.ge.s32.totalorder %s2078_s18, 1  ;;  %s2078_s18 = sphi %s2113_s18, %s15_s18  }
   0x2   : > { %p189_p1 = scmp.lt.s32.totalorder %s2078_s18, 3 }
   0x4   : > { %p190_p2 = pnand %p1314_p0, %p189_p1 }
   0x5   : > { %v272_v0 = vld [vmem:[%s2651_s1] sm:$0xff] (!%p190_p2)  ;;  %v273_v1 = vld [vmem:[%s2651_s1 + $0x8] sm:$0xff] (!%p190_p2)  ;;  %v274_v2 = vld [vmem:[%s2651_s1 + $0x10] sm:$0xff] (!%p190_p2)  ;;  %v2080_v3 = vmov (!%p190_p2), 0.0|0.0   ;;  %vm2081_vm0 = vmmov (!%p190_p2), 0   ;;  %v2082_v6 = vmov (!%p190_p2), 0.0  }
   0x6   : > { %193 = sbr.rel (%p190_p2) target bundleno = 634 (0x27a), region = 40  ;;  %1849 = vmatprep.subr.bf16.mxu0 (!%p190_p2), %v2080_v3  ;;  %v1850_v4 = vpack.c.bf16 (!%p190_p2), %v273_v1, %v272_v0  ;;  %v275_v5 = vld [vmem:[%s2651_s1 + $0x18] sm:$0xff] (!%p190_p2)  ;;  %1559 = vmatprep.mubr.msk.f32.mxu0 (!%p190_p2), %vm2081_vm0, %v2082_v6  ;;  %769 = vst [vmem:[#allocation3] sm:$0x1] (!%p190_p2), %v2082_v6  ;;  %770 = vst [vmem:[#allocation3 + $0x11] sm:$0x1] (!%p190_p2), %v2082_v6 }
   0x7   : > { %773 = vst [vmem:[#allocation3 + $0x12] sm:$0x1] (!%p190_p2), %v2082_v6  ;;  %774 = vst [vmem:[#allocation3 + $0x23] sm:$0x1] (!%p190_p2), %v2082_v6  ;;  %s1315_s28 = sshll.u32 (!%p190_p2), %s1310_s19, 2  ;;  %vm233_vm1 = vcmask (!%p190_p2), 516096   ;;  %1885 = vmatprep.subr.bf16.mxu1 (!%p190_p2), %v2080_v3  ;;  %1704 = vmatprep.mubr.msk.f32.mxu1 (!%p190_p2), %vm2081_vm0, %v2082_v6  ;;  %v1853_v7 = vpack.c.bf16 (!%p190_p2), %v275_v5, %v274_v2 }
   0x8   : > { %778 = vst [vmem:[#allocation3 + $0x24] sm:$0x1] (!%p190_p2), %v2082_v6  ;;  %779 = vst [vmem:[#allocation3 + $0x35] sm:$0x1] (!%p190_p2), %v2082_v6  ;;  %p220_p3 = scmp.lt.s32.totalorder (!%p190_p2), %s1315_s28, 7  ;;  %1851 = vmatpush3.bf16.msra.mxu0 (!%p190_p2), %v1850_v4  ;;  %v276_v8 = vld [vmem:[%s2651_s1 + $0x20] sm:$0xff] (!%p190_p2) }
   0x9   : > { %783 = vst [vmem:[#allocation3 + $0x36] sm:$0x1] (!%p190_p2), %v2082_v6  ;;  %784 = vst [vmem:[#allocation3 + $0x47] sm:$0x1] (!%p190_p2), %v2082_v6  ;;  %1852 = vmatprep.subr.bf16.mxu0 (!%p190_p2), %v2080_v3  ;;  %v277_v9 = vld [vmem:[%s2651_s1 + $0x28] sm:$0xff] (!%p190_p2)  ;;  %vm238_vm2 = vcmask (!%p190_p2), 523264  }
   0xa   : > { %234 = vst.msk [vmem:[#allocation2] sm:$0x1] (!%p190_p2), %vm233_vm1, %v2082_v6  ;;  %235 = vst.msk [vmem:[#allocation2 + $0x11] sm:$0x1] (!%p190_p2), %vm233_vm1, %v2082_v6  ;;  %v1856_v10 = vpack.c.bf16 (!%p190_p2), %v277_v9, %v276_v8  ;;  %v278_v11 = vld [vmem:[%s2651_s1 + $0x30] sm:$0xff] (!%p190_p2)  ;;  %v279_v12 = vld [vmem:[%s2651_s1 + $0x38] sm:$0xff] (!%p190_p2) }
   0xb   : > { %241 = vst.msk [vmem:[#allocation2 + $0x12] sm:$0x1] (!%p190_p2), %vm233_vm1, %v2082_v6  ;;  %242 = vst.msk [vmem:[#allocation2 + $0x23] sm:$0x1] (!%p190_p2), %vm233_vm1, %v2082_v6  ;;  %v798_v21 = vld [vmem:[%s2653_s3] sm:$0xff] (!%p190_p2)  ;;  %v1859_v22 = vpack.c.bf16 (!%p190_p2), %v279_v12, %v278_v11  ;;  %v799_v23 = vld [vmem:[%s2653_s3 + $0x8] sm:$0xff] (!%p190_p2) }
   0xc   : > { %248 = vst.msk [vmem:[#allocation2 + $0x24] sm:$0x1] (!%p190_p2), %vm233_vm1, %v2082_v6  ;;  %249 = vst.msk [vmem:[#allocation2 + $0x35] sm:$0x1] (!%p190_p2), %vm233_vm1, %v2082_v6  ;;  %1854 = vmatpush3.bf16.msra.mxu0 (!%p190_p2), %v1853_v7  ;;  %v800_v24 = vld [vmem:[%s2653_s3 + $0x10] sm:$0xff] (!%p190_p2)  ;;  %v801_v25 = vld [vmem:[%s2653_s3 + $0x18] sm:$0xff] (!%p190_p2)  ;;  %v1886_v28 = vpack.c.bf16 (!%p190_p2), %v799_v23, %v798_v21 }
   0xd   : > { %255 = vst.msk [vmem:[#allocation2 + $0x36] sm:$0x1] %vm233_vm1, %v2082_v6  ;;  %256 = vst.msk [vmem:[#allocation2 + $0x47] sm:$0x1] %vm233_vm1, %v2082_v6  ;;  %s2657_s28 = smov (!%p220_p3, %s1315_s28), 7  ;;  %1855 = vmatprep.subr.bf16.mxu0 %v2080_v3  ;;  %v1337_v26 = vld [vmem:[%s2651_s1 + $0x40] sm:$0xff]  ;;  %v1889_v29 = vpack.c.bf16 %v801_v25, %v800_v24 }
   0xe   : > { %s1415_s8 = sshll.u32 %s2657_s28, 4  ;;  %v1338_v27 = vld [vmem:[%s2651_s1 + $0x48] sm:$0xff]  ;;  %1887 = vmatpush3.bf16.msra.mxu1 %v1886_v28  ;;  %v802_v31 = vld [vmem:[%s2653_s3 + $0x20] sm:$0xff]  ;;  %v1339_v34 = vld [vmem:[%s2651_s1 + $0x50] sm:$0xff] }
   0xf   : > { %s224_s15 = scalar_lea.vmem %s2650_s0, %s1415_s8  ;;  %v1862_v30 = vpack.c.bf16 %v1338_v27, %v1337_v26  ;;  %1888 = vmatprep.subr.bf16.mxu1 %v2080_v3  ;;  %v803_v32 = vld [vmem:[%s2653_s3 + $0x28] sm:$0xff]  ;;  %v1340_v35 = vld [vmem:[%s2651_s1 + $0x58] sm:$0xff]  ;;  %v804_v39 = vld [vmem:[%s2653_s3 + $0x30] sm:$0xff]  ;;  %s2634_s19 = scalar_lea.vmem %s2655_s5, %s1415_s8 }
  0x10   : > { %v236_v13 = vld [vmem:[%s224_s15] sm:$0xff]  ;;  %v237_v14 = vld [vmem:[%s224_s15 + $0x8] sm:$0xff]  ;;  %v1321_v15 = vld [vmem:[%s224_s15 + $0x10] sm:$0xff]  ;;  %1857 = vmatpush3.bf16.msra.mxu0 %v1856_v10  ;;  %v1892_v36 = vpack.c.bf16 %v803_v32, %v802_v31  ;;  %v1865_v38 = vpack.c.bf16 %v1340_v35, %v1339_v34 }
  0x11   : > { %239 = vst.msk [vmem:[#allocation2 + $0x1] sm:$0xff] %vm238_vm2, %v236_v13  ;;  %240 = vst.msk [vmem:[#allocation2 + $0x9] sm:$0xff] %vm238_vm2, %v237_v14  ;;  %v1322_v16 = vld [vmem:[%s224_s15 + $0x18] sm:$0xff]  ;;  %v1323_v17 = vld [vmem:[%s224_s15 + $0x20] sm:$0xff]  ;;  %1858 = vmatprep.subr.bf16.mxu0 %v2080_v3 }
  0x12   : > { %246 = vst.msk [vmem:[#allocation2 + $0x13] sm:$0xff] %vm238_vm2, %v1321_v15  ;;  %v1324_v18 = vld [vmem:[%s224_s15 + $0x28] sm:$0xff]  ;;  %247 = vst.msk [vmem:[#allocation2 + $0x1b] sm:$0xff] %vm238_vm2, %v1322_v16  ;;  %v1325_v19 = vld [vmem:[%s224_s15 + $0x30] sm:$0xff]  ;;  %1890 = vmatpush3.bf16.msra.mxu1 %v1889_v29 }
  0x13   : > { %253 = vst.msk [vmem:[#allocation2 + $0x25] sm:$0xff] %vm238_vm2, %v1323_v17  ;;  %254 = vst.msk [vmem:[#allocation2 + $0x2d] sm:$0xff] %vm238_vm2, %v1324_v18  ;;  %v1326_v20 = vld [vmem:[%s224_s15 + $0x38] sm:$0xff]  ;;  %v1341_v41 = vld [vmem:[%s2651_s1 + $0x60] sm:$0xff]  ;;  %1891 = vmatprep.subr.bf16.mxu1 %v2080_v3 }
  0x14   : > { %260 = vst.msk [vmem:[#allocation2 + $0x37] sm:$0xff] %vm238_vm2, %v1325_v19  ;;  %261 = vst.msk [vmem:[#allocation2 + $0x3f] sm:$0xff] %vm238_vm2, %v1326_v20  ;;  %1860 = vmatpush3.bf16.msra.mxu0 %v1859_v22  ;;  %v805_v40 = vld [vmem:[%s2653_s3 + $0x38] sm:$0xff]  ;;  %v1342_v42 = vld [vmem:[%s2651_s1 + $0x68] sm:$0xff] }
  0x15   : > { %1861 = vmatprep.subr.bf16.mxu0 %v2080_v3  ;;  %v1895_v43 = vpack.c.bf16 %v805_v40, %v804_v39  ;;  %v1868_v45 = vpack.c.bf16 %v1342_v42, %v1341_v41  ;;  %v806_v46 = vld [vmem:[%s2653_s3 + $0x40] sm:$0xff]  ;;  %v807_v47 = vld [vmem:[%s2653_s3 + $0x48] sm:$0xff]  ;;  %v1343_v48 = vld [vmem:[%s2651_s1 + $0x70] sm:$0xff] }
  0x16   : > { %1893 = vmatpush3.bf16.msra.mxu1 %v1892_v36  ;;  %v1344_v49 = vld [vmem:[%s2651_s1 + $0x78] sm:$0xff]  ;;  %v1898_v50 = vpack.c.bf16 %v807_v47, %v806_v46  ;;  %v1354_v58 = vld [vmem:[%s2651_s1 + $0x80] sm:$0xff]  ;;  %v1355_v59 = vld [vmem:[%s2651_s1 + $0x88] sm:$0xff] }
  0x17   : > { %1894 = vmatprep.subr.bf16.mxu1 %v2080_v3  ;;  %v1871_v52 = vpack.c.bf16 %v1344_v49, %v1343_v48  ;;  %v1874_v61 = vpack.c.bf16 %v1355_v59, %v1354_v58  ;;  %v1356_v62 = vld [vmem:[%s2651_s1 + $0x90] sm:$0xff]  ;;  %v1357_v63 = vld [vmem:[%s2651_s1 + $0x98] sm:$0xff]  ;;  %v1358_v2 = vld [vmem:[%s2651_s1 + $0xa0] sm:$0xff] }
  0x18   : > { %v263_v33 = vld [vmem:[#allocation2] sm:$0xff]  ;;  %v264_v37 = vld [vmem:[#allocation2 + $0x8] sm:$0xff]  ;;  %v1877_v1 = vpack.c.bf16 %v1357_v63, %v1356_v62  ;;  %v1360_v8 = vld [vmem:[%s2651_s1 + $0xb0] sm:$0xff] }
  0x19   : > { %1560 = vmatmul.mubr.msk.f32.vlgmr.msra.gmra.mrb[0].mxu0 %vm238_vm2, %v263_v33  ;;  %v265_v44 = vld [vmem:[#allocation2 + $0x10] sm:$0xff]  ;;  %v266_v51 = vld [vmem:[#allocation2 + $0x18] sm:$0xff]  ;;  %v432_v60 = vld [vmem:[#allocation2 + $0x1] sm:$0xff] }
  0x1a   : > { %1863 = vmatpush3.bf16.msra.mxu0 %v1862_v30  ;;  %1562 = vmatprep.mubr.msk.f32.mxu0 %vm2081_vm0, %v2082_v6  ;;  %v267_v53 = vld [vmem:[#allocation2 + $0x20] sm:$0xff]  ;;  %v268_v54 = vld [vmem:[#allocation2 + $0x28] sm:$0xff]  ;;  %v434_v5 = vld [vmem:[#allocation2 + $0x11] sm:$0xff] }
  0x1b   : > { %1864 = vmatprep.subr.bf16.mxu0 %v2080_v3  ;;  %1896 = vmatpush3.bf16.msra.mxu1 %v1895_v43  ;;  %v269_v55 = vld [vmem:[#allocation2 + $0x30] sm:$0xff]  ;;  %v270_v56 = vld [vmem:[#allocation2 + $0x38] sm:$0xff]  ;;  %v271_v57 = vld [vmem:[#allocation2 + $0x40] sm:$0x3f] }
  0x1c   : > { %1897 = vmatprep.subr.bf16.mxu1 %v2080_v3  ;;  %v433_v0 = vld [vmem:[#allocation2 + $0x9] sm:$0xff]  ;;  %v1361_v9 = vld [vmem:[%s2651_s1 + $0xb8] sm:$0xff]  ;;  %v436_v12 = vld [vmem:[#allocation2 + $0x21] sm:$0xff] }
  0x1d   : > { %1563 = vmatmul.mubr.msk.f32.gmra.mrb[2].mxu0 %vm238_vm2, %v264_v37  ;;  %v1359_v4 = vld [vmem:[%s2651_s1 + $0xa8] sm:$0xff]  ;;  %v435_v10 = vld [vmem:[#allocation2 + $0x19] sm:$0xff]  ;;  %v1883_v11 = vpack.c.bf16 %v1361_v9, %v1360_v8  ;;  %v438_v14 = vld [vmem:[#allocation2 + $0x31] sm:$0xff] }
  0x1e   : > { %1565 = vmatprep.mubr.msk.f32.mxu0 %vm2081_vm0, %v2082_v6  ;;  %1866 = vmatpush3.bf16.msra.mxu0 %v1865_v38  ;;  %v1880_v7 = vpack.c.bf16 %v1359_v4, %v1358_v2  ;;  %v437_v13 = vld [vmem:[#allocation2 + $0x29] sm:$0xff]  ;;  %v439_v15 = vld [vmem:[#allocation2 + $0x39] sm:$0xff]  ;;  %v440_v16 = vld [vmem:[#allocation2 + $0x41] sm:$0x3f] }
  0x1f   : > { %1867 = vmatprep.subr.bf16.mxu0 %v2080_v3  ;;  %1899 = vmatpush3.bf16.msra.mxu1 %v1898_v50  ;;  %v1388_v17 = vld [vmem:[%s2653_s3 + $0x100] sm:$0xff]  ;;  %v1389_v18 = vld [vmem:[%s2653_s3 + $0x108] sm:$0xff]  ;;  %v1390_v21 = vld [vmem:[%s2653_s3 + $0x110] sm:$0xff] }
  0x20   : > { %1900 = vmatprep.subr.bf16.mxu1 %v2080_v3  ;;  %v596_v19 = vld [vmem:[#allocation2 + $0x2] sm:$0xff]  ;;  %v2339_v20 = vpack.c.bf16 %v1389_v18, %v1388_v17  ;;  %v1391_v22 = vld [vmem:[%s2653_s3 + $0x118] sm:$0xff]  ;;  %v597_v23 = vld [vmem:[#allocation2 + $0xa] sm:$0xff] }
  0x21   : > { %1566 = vmatmul.mubr.msk.f32.gmra.mrb[4].mxu0 %vm238_vm2, %v265_v44  ;;  %v2351_v24 = vpack.c.bf16 %v1391_v22, %v1390_v21  ;;  %v1392_v25 = vld [vmem:[%s2653_s3 + $0x120] sm:$0xff]  ;;  %v1393_v26 = vld [vmem:[%s2653_s3 + $0x128] sm:$0xff]  ;;  %v598_v27 = vld [vmem:[#allocation2 + $0x12] sm:$0xff] }
  0x22   : > { %1568 = vmatprep.mubr.msk.f32.mxu0 %vm2081_vm0, %v2082_v6  ;;  %1869 = vmatpush3.bf16.msra.mxu0 %v1868_v45  ;;  %v2364_v28 = vpack.c.bf16 %v1393_v26, %v1392_v25  ;;  %v1394_v29 = vld [vmem:[%s2653_s3 + $0x130] sm:$0xff]  ;;  %v1395_v30 = vld [vmem:[%s2653_s3 + $0x138] sm:$0xff]  ;;  %v600_v33 = vld [vmem:[#allocation2 + $0x22] sm:$0xff] }
  0x23   : > { %1870 = vmatprep.subr.bf16.mxu0 %v2080_v3  ;;  %v599_v31 = vld [vmem:[#allocation2 + $0x1a] sm:$0xff]  ;;  %v2377_v32 = vpack.c.bf16 %v1395_v30, %v1394_v29  ;;  %v601_v34 = vld [vmem:[#allocation2 + $0x2a] sm:$0xff]  ;;  %v602_v35 = vld [vmem:[#allocation2 + $0x32] sm:$0xff] }
  0x24   : > { %v603_v36 = vld [vmem:[#allocation2 + $0x3a] sm:$0xff]  ;;  %v604_v37 = vld [vmem:[#allocation2 + $0x42] sm:$0x3f]  ;;  %v808_v38 = vld [vmem:[%s2653_s3 + $0x50] sm:$0xff] }
  0x25   : > { %1569 = vmatmul.mubr.msk.f32.gmra.mrb[6].mxu0 %vm238_vm2, %v266_v51  ;;  %v809_v39 = vld [vmem:[%s2653_s3 + $0x58] sm:$0xff]  ;;  %v1396_v40 = vld [vmem:[%s2653_s3 + $0x140] sm:$0xff]  ;;  %v1397_v42 = vld [vmem:[%s2653_s3 + $0x148] sm:$0xff] }
  0x26   : > { %1571 = vmatprep.mubr.msk.f32.mxu0 %vm2081_vm0, %v2082_v6  ;;  %1872 = vmatpush3.bf16.msra.mxu0 %v1871_v52  ;;  %v1901_v41 = vpack.c.bf16 %v809_v39, %v808_v38  ;;  %v2412_v43 = vpack.c.bf16 %v1397_v42, %v1396_v40  ;;  %v810_v44 = vld [vmem:[%s2653_s3 + $0x60] sm:$0xff]  ;;  %v811_v45 = vld [vmem:[%s2653_s3 + $0x68] sm:$0xff]  ;;  %v1398_v46 = vld [vmem:[%s2653_s3 + $0x150] sm:$0xff] }
  0x27   : > { %1873 = vmatprep.subr.bf16.mxu0 %v2080_v3  ;;  %v1904_v47 = vpack.c.bf16 %v811_v45, %v810_v44  ;;  %v1399_v48 = vld [vmem:[%s2653_s3 + $0x158] sm:$0xff]  ;;  %v812_v50 = vld [vmem:[%s2653_s3 + $0x70] sm:$0xff]  ;;  %v1400_v52 = vld [vmem:[%s2653_s3 + $0x160] sm:$0xff] }
  0x28   : > { %1902 = vmatpush3.bf16.msra.mxu1 %v1901_v41  ;;  %v2429_v49 = vpack.c.bf16 %v1399_v48, %v1398_v46  ;;  %v813_v51 = vld [vmem:[%s2653_s3 + $0x78] sm:$0xff]  ;;  %v2463_v59 = vld [vmem:[%s2652_s2] ss:$0 sm:$0xff]  ;;  %v1381_v45 = vld [vmem:[%s2653_s3 + $0xc8] sm:$0xff] }
  0x29   : > { %1572 = vmatmul.mubr.msk.f32.gmra.mrb[8].mxu0 %vm238_vm2, %v267_v53  ;;  %1903 = vmatprep.subr.bf16.mxu1 %v2080_v3  ;;  %v1907_v53 = vpack.c.bf16 %v813_v51, %v812_v50  ;;  %v1376_v22 = vld [vmem:[%s2653_s3 + $0xa0] sm:$0xff] }
  0x2a   : > { %1574 = vmatprep.mubr.msk.f32.mxu0 %vm2081_vm0, %v2082_v6  ;;  %v1380_v44 = vld [vmem:[%s2653_s3 + $0xc0] sm:$0xff] }
  0x2b   : > { %v1922_v51 = vpack.c.bf16 %v1381_v45, %v1380_v44 }
  0x2c   : > { %1905 = vmatpush3.bf16.msra.mxu1 %v1904_v47 }
  0x2d   : > { %1575 = vmatmul.mubr.msk.f32.gmra.mrb[10].mxu0 %vm238_vm2, %v268_v54  ;;  %1906 = vmatprep.subr.bf16.mxu1 %v2080_v3  ;;  %v1401_v54 = vld [vmem:[%s2653_s3 + $0x168] sm:$0xff] }
  0x2e   : > { %1577 = vmatprep.mubr.msk.f32.mxu0 %vm2081_vm0, %v2082_v6 }
  0x30   : > { %1908 = vmatpush3.bf16.msra.mxu1 %v1907_v53  ;;  %v1382_v53 = vld [vmem:[%s2653_s3 + $0xd0] sm:$0xff] }
  0x31   : > { %1578 = vmatmul.mubr.msk.f32.gmra.mrb[12].mxu0 %vm238_vm2, %v269_v55  ;;  %v2446_v55 = vpack.c.bf16 %v1401_v54, %v1400_v52  ;;  %1909 = vmatprep.subr.bf16.mxu1 %v2080_v3  ;;  %v1383_v54 = vld [vmem:[%s2653_s3 + $0xd8] sm:$0xff] }
  0x32   : > { %1580 = vmatprep.mubr.msk.f32.mxu0 %vm2081_vm0, %v2082_v6 }
  0x35   : > { %1581 = vmatmul.mubr.msk.f32.gmra.mrb[14].mxu0 %vm238_vm2, %v270_v56  ;;  %v1402_v56 = vld [vmem:[%s2653_s3 + $0x170] sm:$0xff] }
  0x36   : > { %1583 = vmatprep.mubr.msk.f32.mxu0 %vm2081_vm0, %v2082_v6 }
  0x39   : > { %1584 = vmatmul.mubr.msk.f32.gmra.mrb[16].mxu0 %vm238_vm2, %v271_v57  ;;  %v1403_v57 = vld [vmem:[%s2653_s3 + $0x178] sm:$0xff] }
  0x3a   : > { %1602 = vmatprep.mubr.msk.f32.mxu0 %vm2081_vm0, %v2082_v6  ;;  %v2457_v58 = vpack.c.bf16 %v1403_v57, %v1402_v56 }
  0x3d   : > { %1603 = vmatmul.mubr.msk.f32.vlgmr.msra.gmra.mrb[0].mxu0 %vm238_vm2, %v432_v60 }
  0x3e   : > { %1875 = vmatpush3.bf16.msra.mxu0 %v1874_v61  ;;  %1605 = vmatprep.mubr.msk.f32.mxu0 %vm2081_vm0, %v2082_v6 }
  0x3f   : > { %1876 = vmatprep.subr.bf16.mxu0 %v2080_v3 }
  0x41   : > { %1606 = vmatmul.mubr.msk.f32.gmra.mrb[2].mxu0 %vm238_vm2, %v433_v0 }
  0x42   : > { %1608 = vmatprep.mubr.msk.f32.mxu0 %vm2081_vm0, %v2082_v6  ;;  %1878 = vmatpush3.bf16.msra.mxu0 %v1877_v1 }
  0x43   : > { %1879 = vmatprep.subr.bf16.mxu0 %v2080_v3 }
  0x45   : > { %1609 = vmatmul.mubr.msk.f32.gmra.mrb[4].mxu0 %vm238_vm2, %v434_v5  ;;  %v1372_v5 = vld [vmem:[%s2653_s3 + $0x80] sm:$0xff] }
  0x46   : > { %1611 = vmatprep.mubr.msk.f32.mxu0 %vm2081_vm0, %v2082_v6  ;;  %1881 = vmatpush3.bf16.msra.mxu0 %v1880_v7  ;;  %v1373_v7 = vld [vmem:[%s2653_s3 + $0x88] sm:$0xff] }
  0x47   : > { %1882 = vmatprep.subr.bf16.mxu0 %v2080_v3 }
  0x49   : > { %1612 = vmatmul.mubr.msk.f32.gmra.mrb[6].mxu0 %vm238_vm2, %v435_v10 }
  0x4a   : > { %1614 = vmatprep.mubr.msk.f32.mxu0 %vm2081_vm0, %v2082_v6  ;;  %1884 = vmatpush3.bf16.msra.mxu0 %v1883_v11  ;;  %v1910_v11 = vpack.c.bf16 %v1373_v7, %v1372_v5  ;;  %v1384_v5 = vld [vmem:[%s2653_s3 + $0xe0] sm:$0xff]  ;;  %v1385_v7 = vld [vmem:[%s2653_s3 + $0xe8] sm:$0xff] }
  0x4b   : > { %1933 = vmatprep.subr.bf16.mxu0 %v2080_v3 }
  0x4d   : > { %1615 = vmatmul.mubr.msk.f32.gmra.mrb[8].mxu0 %vm238_vm2, %v436_v12 }
  0x4e   : > { %1617 = vmatprep.mubr.msk.f32.mxu0 %vm2081_vm0, %v2082_v6 }
  0x51   : > { %1618 = vmatmul.mubr.msk.f32.gmra.mrb[10].mxu0 %vm238_vm2, %v437_v13  ;;  %v1374_v13 = vld [vmem:[%s2653_s3 + $0x90] sm:$0xff] }
  0x52   : > { %1620 = vmatprep.mubr.msk.f32.mxu0 %vm2081_vm0, %v2082_v6 }
  0x55   : > { %1621 = vmatmul.mubr.msk.f32.gmra.mrb[12].mxu0 %vm238_vm2, %v438_v14  ;;  %v1375_v14 = vld [vmem:[%s2653_s3 + $0x98] sm:$0xff] }
  0x56   : > { %1623 = vmatprep.mubr.msk.f32.mxu0 %vm2081_vm0, %v2082_v6 }
  0x59   : > { %1624 = vmatmul.mubr.msk.f32.gmra.mrb[14].mxu0 %vm238_vm2, %v439_v15 }
  0x5a   : > { %1626 = vmatprep.mubr.msk.f32.mxu0 %vm2081_vm0, %v2082_v6 }
  0x5d   : > { %1627 = vmatmul.mubr.msk.f32.gmra.mrb[16].mxu0 %vm238_vm2, %v440_v16 }
  0x5e   : > { %1645 = vmatprep.mubr.msk.f32.mxu0 %vm2081_vm0, %v2082_v6 }
  0x61   : > { %1646 = vmatmul.mubr.msk.f32.vlgmr.msra.gmra.mrb[0].mxu0 %vm238_vm2, %v596_v19  ;;  %v1913_v19 = vpack.c.bf16 %v1375_v14, %v1374_v13  ;;  %v1386_v14 = vld [vmem:[%s2653_s3 + $0xf0] sm:$0xff] }
  0x62   : > { %1648 = vmatprep.mubr.msk.f32.mxu0 %vm2081_vm0, %v2082_v6  ;;  %1935 = vmatpush3.bf16.msra.mxu0 %v2339_v20 }
  0x63   : > { %1936 = vmatprep.subr.bf16.mxu0 %v2080_v3 }
  0x65   : > { %1649 = vmatmul.mubr.msk.f32.gmra.mrb[2].mxu0 %vm238_vm2, %v597_v23  ;;  %v1377_v23 = vld [vmem:[%s2653_s3 + $0xa8] sm:$0xff] }
  0x66   : > { %1651 = vmatprep.mubr.msk.f32.mxu0 %vm2081_vm0, %v2082_v6  ;;  %1938 = vmatpush3.bf16.msra.mxu0 %v2351_v24 }
  0x67   : > { %1939 = vmatprep.subr.bf16.mxu0 %v2080_v3 }
  0x69   : > { %1652 = vmatmul.mubr.msk.f32.gmra.mrb[4].mxu0 %vm238_vm2, %v598_v27 }
  0x6a   : > { %1654 = vmatprep.mubr.msk.f32.mxu0 %vm2081_vm0, %v2082_v6  ;;  %1941 = vmatpush3.bf16.msra.mxu0 %v2364_v28 }
  0x6b   : > { %1942 = vmatprep.subr.bf16.mxu0 %v2080_v3 }
  0x6d   : > { %1655 = vmatmul.mubr.msk.f32.gmra.mrb[6].mxu0 %vm238_vm2, %v599_v31  ;;  %v1916_v31 = vpack.c.bf16 %v1377_v23, %v1376_v22 }
  0x6e   : > { %1657 = vmatprep.mubr.msk.f32.mxu0 %vm2081_vm0, %v2082_v6  ;;  %1944 = vmatpush3.bf16.msra.mxu0 %v2377_v32 }
  0x6f   : > { %1945 = vmatprep.subr.bf16.mxu0 %v2080_v3 }
  0x71   : > { %1658 = vmatmul.mubr.msk.f32.gmra.mrb[8].mxu0 %vm238_vm2, %v600_v33 }
  0x72   : > { %1660 = vmatprep.mubr.msk.f32.mxu0 %vm2081_vm0, %v2082_v6  ;;  %1947 = vmatpush3.bf16.msra.mxu0 %v2412_v43 }
  0x73   : > { %1948 = vmatprep.subr.bf16.mxu0 %v2080_v3 }
  0x75   : > { %1661 = vmatmul.mubr.msk.f32.gmra.mrb[10].mxu0 %vm238_vm2, %v601_v34  ;;  %v1378_v34 = vld [vmem:[%s2653_s3 + $0xb0] sm:$0xff] }
  0x76   : > { %1663 = vmatprep.mubr.msk.f32.mxu0 %vm2081_vm0, %v2082_v6  ;;  %1950 = vmatpush3.bf16.msra.mxu0 %v2429_v49 }
  0x77   : > { %1951 = vmatprep.subr.bf16.mxu0 %v2080_v3 }
  0x79   : > { %1664 = vmatmul.mubr.msk.f32.gmra.mrb[12].mxu0 %vm238_vm2, %v602_v35  ;;  %v1379_v35 = vld [vmem:[%s2653_s3 + $0xb8] sm:$0xff] }
  0x7a   : > { %1666 = vmatprep.mubr.msk.f32.mxu0 %vm2081_vm0, %v2082_v6  ;;  %1953 = vmatpush3.bf16.msra.mxu0 %v2446_v55  ;;  %v1919_v41 = vpack.c.bf16 %v1379_v35, %v1378_v34 }
  0x7b   : > { %1954 = vmatprep.subr.bf16.mxu0 %v2080_v3 }
  0x7d   : > { %1667 = vmatmul.mubr.msk.f32.gmra.mrb[14].mxu0 %vm238_vm2, %v603_v36 }
  0x7e   : > { %1669 = vmatprep.mubr.msk.f32.mxu0 %vm2081_vm0, %v2082_v6  ;;  %1956 = vmatpush3.bf16.msra.mxu0 %v2457_v58 }
  0x81   : > { %1670 = vmatmul.mubr.msk.f32.gmra.mrb[16].mxu0 %vm238_vm2, %v604_v37 }
  0x82   : > { %1822 = vmatprep.mubr.msk.f32.mxu0 %vm2081_vm0, %v2082_v6 }
 0x134   : > { %v707_v60 = vpop.f32.mrb[0].mxu0 }
 0x135   : > { %v2466_v61 = vadd.f32 %v2463_v59, %v707_v60  ;;  %v1647_v62 = vpop.f32.mrb[1].mxu0 }
 0x137   : > { %v760_v63 = vmax.f32 %v2466_v61, 0.0 }
 0x138   : > { %v712_v0 = vpop.f32.mrb[2].mxu0 }
 0x139   : > { %771 = vst [vmem:[#allocation3 + $0x1] sm:$0xff] %v760_v63  ;;  %v2472_v1 = vadd.f32 %v2463_v59, %v712_v0  ;;  %v1650_v2 = vpop.f32.mrb[3].mxu0  ;;  %v1925_v0 = vpack.c.bf16 %v1383_v54, %v1382_v53 }
 0x13b   : > { %v761_v4 = vmax.f32 %v2472_v1, 0.0 }
 0x13c   : > { %v717_v8 = vpop.f32.mrb[4].mxu0 }
 0x13d   : > { %772 = vst [vmem:[#allocation3 + $0x9] sm:$0xff] %v761_v4  ;;  %v1975_v9 = vadd.f32 %v2463_v59, %v717_v8  ;;  %v1653_v10 = vpop.f32.mrb[5].mxu0 }
 0x13f   : > { %v762_v12 = vmax.f32 %v1975_v9, 0.0 }
 0x140   : > { %v722_v15 = vpop.f32.mrb[6].mxu0  ;;  %v789_v16 = vld [vmem:[#allocation3] sm:$0xff] }
 0x141   : > { %775 = vst [vmem:[#allocation3 + $0x11] sm:$0xfc] %v762_v12  ;;  %v2491_v17 = vadd.f32 %v2463_v59, %v722_v15  ;;  %v1656_v18 = vpop.f32.mrb[7].mxu0  ;;  %1705 = vmatmul.mubr.f32.vlgmr.msra.gmra.mrb[0].mxu1 %v789_v16  ;;  %v1928_v12 = vpack.c.bf16 %v1385_v7, %v1384_v5  ;;  %v1387_v15 = vld [vmem:[%s2653_s3 + $0xf8] sm:$0xff] }
 0x142   : > { %1911 = vmatpush3.bf16.msra.mxu1 %v1910_v11  ;;  %1707 = vmatprep.mubr.msk.f32.mxu1 %vm2081_vm0, %v2082_v6 }
 0x143   : > { %v763_v21 = vmax.f32 %v2491_v17, 0.0  ;;  %1912 = vmatprep.subr.bf16.mxu1 %v2080_v3 }
 0x144   : > { %v727_v25 = vpop.f32.mrb[8].mxu0  ;;  %v790_v26 = vld [vmem:[#allocation3 + $0x8] sm:$0xff] }
 0x145   : > { %v1084_v27 = vld [vmem:[#allocation3 + $0x2] sm:$0xff]  ;;  %776 = vst [vmem:[#allocation3 + $0x19] sm:$0xff] %v763_v21  ;;  %v1977_v29 = vadd.f32 %v2463_v59, %v727_v25  ;;  %v1659_v30 = vpop.f32.mrb[9].mxu0  ;;  %1708 = vmatmul.mubr.f32.gmra.mrb[2].mxu1 %v790_v26  ;;  %v1085_v38 = vld [vmem:[#allocation3 + $0xa] sm:$0xff] }
 0x146   : > { %1823 = vmatmul.mubr.f32.vlgmr.msra.gmra.mrb[18].mxu0 %v1084_v27  ;;  %1914 = vmatpush3.bf16.msra.mxu1 %v1913_v19 }
 0x147   : > { %1710 = vmatprep.mubr.msk.f32.mxu1 %vm2081_vm0, %v2082_v6  ;;  %v764_v33 = vmax.f32 %v1977_v29, 0.0  ;;  %1825 = vmatprep.mubr.msk.f32.mxu0 %vm2081_vm0, %v2082_v6 }
 0x148   : > { %1915 = vmatprep.subr.bf16.mxu1 %v2080_v3  ;;  %v732_v36 = vpop.f32.mrb[10].mxu0  ;;  %v791_v37 = vld [vmem:[#allocation3 + $0x10] sm:$0xff] }
 0x149   : > { %777 = vst [vmem:[#allocation3 + $0x21] sm:$0xf3] %v764_v33   ;;  %v2518_v39 = vadd.f32 %v2463_v59, %v732_v36  ;;  %v1662_v40 = vpop.f32.mrb[11].mxu0  ;;  %1711 = vmatmul.mubr.f32.gmra.mrb[4].mxu1 %v791_v37  ;;  %v941_v22 = vld [vmem:[#allocation3 + $0x11] sm:$0xff] }
 0x14a   : > { %1826 = vmatmul.mubr.f32.gmra.mrb[20].mxu0 %v1085_v38  ;;  %1917 = vmatpush3.bf16.msra.mxu1 %v1916_v31 }
 0x14b   : > { %1713 = vmatprep.mubr.msk.f32.mxu1 %vm2081_vm0, %v2082_v6  ;;  %v765_v42 = vmax.f32 %v2518_v39, 0.0  ;;  %1918 = vmatprep.subr.bf16.mxu1 %v2080_v3 }
 0x14c   : > { %v737_v46 = vpop.f32.mrb[12].mxu0  ;;  %v792_v47 = vld [vmem:[#allocation3 + $0x18] sm:$0xff] }
 0x14d   : > { %781 = vst [vmem:[#allocation3 + $0x29] sm:$0xff] %v765_v42  ;;  %v1979_v48 = vadd.f32 %v2463_v59, %v737_v46  ;;  %v1665_v50 = vpop.f32.mrb[13].mxu0  ;;  %1714 = vmatmul.mubr.f32.gmra.mrb[6].mxu1 %v792_v47 }
 0x14e   : > { %1716 = vmatprep.mubr.msk.f32.mxu1 %vm2081_vm0, %v2082_v6  ;;  %1920 = vmatpush3.bf16.msra.mxu1 %v1919_v41 }
 0x14f   : > { %v766_v52 = vmax.f32 %v1979_v48, 0.0  ;;  %1921 = vmatprep.subr.bf16.mxu1 %v2080_v3 }
 0x150   : > { %v742_v56 = vpop.f32.mrb[14].mxu0  ;;  %v793_v57 = vld [vmem:[#allocation3 + $0x20] sm:$0xff] }
 0x151   : > { %782 = vst [vmem:[#allocation3 + $0x31] sm:$0xcf] %v766_v52   ;;  %v2543_v60 = vadd.f32 %v2463_v59, %v742_v56  ;;  %v1668_v62 = vpop.f32.mrb[15].mxu0  ;;  %1717 = vmatmul.mubr.f32.gmra.mrb[8].mxu1 %v793_v57 }
 0x152   : > { %1719 = vmatprep.mubr.msk.f32.mxu1 %vm2081_vm0, %v2082_v6  ;;  %1923 = vmatpush3.bf16.msra.mxu1 %v1922_v51 }
 0x153   : > { %v767_v2 = vmax.f32 %v2543_v60, 0.0  ;;  %1924 = vmatprep.subr.bf16.mxu1 %v2080_v3 }
 0x154   : > { %v747_v8 = vpop.f32.mrb[16].mxu0  ;;  %v794_v9 = vld [vmem:[#allocation3 + $0x28] sm:$0xff] }
 0x155   : > { %786 = vst [vmem:[#allocation3 + $0x39] sm:$0xff] %v767_v2  ;;  %v1981_v10 = vadd.f32 %v2463_v59, %v747_v8  ;;  %v1671_v11 = vpop.f32.mrb[17].mxu0  ;;  %1720 = vmatmul.mubr.f32.gmra.mrb[10].mxu1 %v794_v9  ;;  %v1931_v59 = vpack.c.bf16 %v1387_v15, %v1386_v14 }
 0x156   : > { %1722 = vmatprep.mubr.msk.f32.mxu1 %vm2081_vm0, %v2082_v6  ;;  %1926 = vmatpush3.bf16.msra.mxu1 %v1925_v0 }
 0x157   : > { %v768_v13 = vmax.f32 %v1981_v10, 0.0  ;;  %1927 = vmatprep.subr.bf16.mxu1 %v2080_v3 }
 0x158   : > { %v795_v16 = vld [vmem:[#allocation3 + $0x30] sm:$0xff] }
 0x159   : > { %787 = vst [vmem:[#allocation3 + $0x41] sm:$0x3f] %v768_v13  ;;  %1723 = vmatmul.mubr.f32.gmra.mrb[12].mxu1 %v795_v16 }
 0x15a   : > { %1725 = vmatprep.mubr.msk.f32.mxu1 %vm2081_vm0, %v2082_v6  ;;  %1929 = vmatpush3.bf16.msra.mxu1 %v1928_v12 }
 0x15b   : > { %1930 = vmatprep.subr.bf16.mxu1 %v2080_v3 }
 0x15c   : > { %v796_v18 = vld [vmem:[#allocation3 + $0x38] sm:$0xff] }
 0x15d   : > { %1726 = vmatmul.mubr.f32.gmra.mrb[14].mxu1 %v796_v18 }
 0x15e   : > { %1728 = vmatprep.mubr.msk.f32.mxu1 %vm2081_vm0, %v2082_v6  ;;  %1932 = vmatpush3.bf16.msra.mxu1 %v1931_v59 }
 0x15f   : > { %1957 = vmatprep.subr.bf16.mxu1 %v2080_v3 }
 0x160   : > { %v797_v19 = vld [vmem:[#allocation3 + $0x40] sm:$0x3f] }
 0x161   : > { %1729 = vmatmul.mubr.f32.gmra.mrb[16].mxu1 %v797_v19  ;;  %v1092_v61 = vld [vmem:[#allocation3 + $0x42] sm:$0x3f] }
 0x162   : > { %1763 = vmatprep.mubr.msk.f32.mxu1 %vm2081_vm0, %v2082_v6 }
 0x165   : > { %1764 = vmatmul.mubr.f32.vlgmr.msra.gmra.mrb[0].mxu1 %v760_v63 }
 0x166   : > { %1965 = vmatpush3.bf16.msra.mxu1 %v2339_v20  ;;  %1766 = vmatprep.mubr.msk.f32.mxu1 %vm2081_vm0, %v2082_v6  ;;  %v943_v20 = vld [vmem:[#allocation3 + $0x21] sm:$0xff] }
 0x167   : > { %1958 = vmatprep.subr.bf16.mxu1 %v2080_v3 }
 0x169   : > { %1767 = vmatmul.mubr.f32.gmra.mrb[2].mxu1 %v761_v4 }
 0x16a   : > { %1966 = vmatpush3.bf16.msra.mxu1 %v2351_v24  ;;  %1769 = vmatprep.mubr.msk.f32.mxu1 %vm2081_vm0, %v2082_v6  ;;  %v945_v24 = vld [vmem:[#allocation3 + $0x31] sm:$0xff] }
 0x16b   : > { %1959 = vmatprep.subr.bf16.mxu1 %v2080_v3 }
 0x16d   : > { %1770 = vmatmul.mubr.f32.gmra.mrb[4].mxu1 %v941_v22 }
 0x16e   : > { %1967 = vmatpush3.bf16.msra.mxu1 %v2364_v28  ;;  %1772 = vmatprep.mubr.msk.f32.mxu1 %vm2081_vm0, %v2082_v6  ;;  %v947_v28 = vld [vmem:[#allocation3 + $0x41] sm:$0x3f] }
 0x16f   : > { %1960 = vmatprep.subr.bf16.mxu1 %v2080_v3 }
 0x171   : > { %1773 = vmatmul.mubr.f32.gmra.mrb[6].mxu1 %v763_v21  ;;  %v1371_v21 = vld [vmem:[%s2654_s4] ss:$0 sm:$0xff] }
 0x172   : > { %1775 = vmatprep.mubr.msk.f32.mxu1 %vm2081_vm0, %v2082_v6  ;;  %1968 = vmatpush3.bf16.msra.mxu1 %v2377_v32  ;;  %v1086_v32 = vld [vmem:[#allocation3 + $0x12] sm:$0xff] }
 0x173   : > { %1961 = vmatprep.subr.bf16.mxu1 %v2080_v3 }
 0x175   : > { %1776 = vmatmul.mubr.f32.gmra.mrb[8].mxu1 %v943_v20 }
 0x176   : > { %1778 = vmatprep.mubr.msk.f32.mxu1 %vm2081_vm0, %v2082_v6  ;;  %1969 = vmatpush3.bf16.msra.mxu1 %v2412_v43  ;;  %v1087_v43 = vld [vmem:[#allocation3 + $0x1a] sm:$0xff] }
 0x177   : > { %1962 = vmatprep.subr.bf16.mxu1 %v2080_v3 }
 0x179   : > { %1779 = vmatmul.mubr.f32.gmra.mrb[10].mxu1 %v765_v42 }
 0x17a   : > { %1781 = vmatprep.mubr.msk.f32.mxu1 %vm2081_vm0, %v2082_v6  ;;  %1970 = vmatpush3.bf16.msra.mxu1 %v2429_v49  ;;  %v1089_v49 = vld [vmem:[#allocation3 + $0x2a] sm:$0xff] }
 0x17b   : > { %1963 = vmatprep.subr.bf16.mxu1 %v2080_v3 }
 0x17d   : > { %1782 = vmatmul.mubr.f32.gmra.mrb[12].mxu1 %v945_v24 }
 0x17e   : > { %1784 = vmatprep.mubr.msk.f32.mxu1 %vm2081_vm0, %v2082_v6  ;;  %1971 = vmatpush3.bf16.msra.mxu1 %v2446_v55  ;;  %v1090_v55 = vld [vmem:[#allocation3 + $0x32] sm:$0xff] }
 0x17f   : > { %1964 = vmatprep.subr.bf16.mxu1 %v2080_v3  ;;  %v1088_v3 = vld [vmem:[#allocation3 + $0x22] sm:$0xff] }
 0x181   : > { %1785 = vmatmul.mubr.f32.gmra.mrb[14].mxu1 %v767_v2 }
 0x182   : > { %1787 = vmatprep.mubr.msk.f32.mxu1 %vm2081_vm0, %v2082_v6  ;;  %1972 = vmatpush3.bf16.msra.mxu1 %v2457_v58  ;;  %v1091_v58 = vld [vmem:[#allocation3 + $0x3a] sm:$0xff] }
 0x185   : > { %1788 = vmatmul.mubr.f32.gmra.mrb[16].mxu1 %v947_v28 }
 0x186   : > { %1828 = vmatprep.mubr.msk.f32.mxu1 %vm2081_vm0, %v2082_v6 }
 0x189   : > { %1829 = vmatmul.mubr.f32.vlgmr.msra.gmra.mrb[4].mxu1 %v1086_v32 }
 0x18a   : > { %1831 = vmatprep.mubr.msk.f32.mxu1 %vm2081_vm0, %v2082_v6 }
 0x18d   : > { %1832 = vmatmul.mubr.f32.gmra.mrb[6].mxu1 %v1087_v43 }
 0x18e   : > { %1834 = vmatprep.mubr.msk.f32.mxu1 %vm2081_vm0, %v2082_v6 }
 0x191   : > { %1835 = vmatmul.mubr.f32.gmra.mrb[8].mxu1 %v1088_v3 }
 0x192   : > { %1837 = vmatprep.mubr.msk.f32.mxu1 %vm2081_vm0, %v2082_v6 }
 0x195   : > { %1838 = vmatmul.mubr.f32.gmra.mrb[10].mxu1 %v1089_v49 }
 0x196   : > { %1840 = vmatprep.mubr.msk.f32.mxu1 %vm2081_vm0, %v2082_v6 }
 0x199   : > { %1841 = vmatmul.mubr.f32.gmra.mrb[12].mxu1 %v1090_v55 }
 0x19a   : > { %1843 = vmatprep.mubr.msk.f32.mxu1 %vm2081_vm0, %v2082_v6 }
 0x19d   : > { %1844 = vmatmul.mubr.f32.gmra.mrb[14].mxu1 %v1091_v58 }
 0x19e   : > { %1846 = vmatprep.mubr.msk.f32.mxu1 %vm2081_vm0, %v2082_v6 }
 0x1a1   : > { %1847 = vmatmul.mubr.f32.gmra.mrb[16].mxu1 %v1092_v61 }
 0x219   : > { %v1176_v63 = vpop.f32.mrb[18].mxu0 }
 0x21a   : > { %v1824_v1 = vpop.f32.mrb[19].mxu0 }
 0x21d   : > { %v1181_v4 = vpop.f32.mrb[20].mxu0 }
 0x21e   : > { %v1827_v17 = vpop.f32.mrb[21].mxu0 }
 0x238   : > { %v1031_v23 = vpop.f32.mrb[0].mxu1 }
 0x239   : > { %v1982_v25 = vadd.f32 %v1371_v21, %v1031_v23  ;;  %v1765_v26 = vpop.f32.mrb[1].mxu1 }
 0x23b   : > { %v1983_v27 = vadd.f32 %v1982_v25, %v1176_v63 }
 0x23c   : > { %v1036_v6 = vpop.f32.mrb[2].mxu1 }
 0x23d   : > { %v1229_v29 = vmax.f32 %v1983_v27, 0.0  ;;  %v1984_v30 = vadd.f32 %v1371_v21, %v1036_v6  ;;  %v1768_v31 = vpop.f32.mrb[3].mxu1 }
 0x23f   : > { %1238 = vst [vmem:[%s2634_s19] sm:$0xff] %v1229_v29  ;;  %v1985_v33 = vadd.f32 %v1984_v30, %v1181_v4 }
 0x241   : > { %v1230_v34 = vmax.f32 %v1985_v33, 0.0 }
 0x243   : > { %1239 = vst [vmem:[%s2634_s19 + $0x8] sm:$0xff] %v1230_v34 }
 0x25c   : > { %v1186_v35 = vpop.f32.mrb[4].mxu1 }
 0x25d   : > { %v1986_v36 = vadd.f32 %v1371_v21, %v1186_v35  ;;  %v1830_v37 = vpop.f32.mrb[5].mxu1 }
 0x25f   : > { %v1231_v38 = vmax.f32 %v1986_v36, 0.0 }
 0x260   : > { %v1191_v39 = vpop.f32.mrb[6].mxu1 }
 0x261   : > { %1404 = vst [vmem:[%s2634_s19 + $0xe] sm:$0xfc] %v1231_v38  ;;  %v1987_v40 = vadd.f32 %v1371_v21, %v1191_v39  ;;  %v1833_v41 = vpop.f32.mrb[7].mxu1 }
 0x263   : > { %v1232_v42 = vmax.f32 %v1987_v40, 0.0 }
 0x264   : > { %v1196_v44 = vpop.f32.mrb[8].mxu1 }
 0x265   : > { %1405 = vst [vmem:[%s2634_s19 + $0x16] sm:$0xff] %v1232_v42  ;;  %v1988_v45 = vadd.f32 %v1371_v21, %v1196_v44  ;;  %v1836_v46 = vpop.f32.mrb[9].mxu1 }
 0x267   : > { %v1233_v47 = vmax.f32 %v1988_v45, 0.0 }
 0x268   : > { %v1201_v48 = vpop.f32.mrb[10].mxu1 }
 0x269   : > { %1406 = vst [vmem:[%s2634_s19 + $0x1e] sm:$0x3] %v1233_v47  ;;  %1407 = vst [vmem:[%s2634_s19 + $0x1c] sm:$0xf0] %v1233_v47  ;;  %v1989_v50 = vadd.f32 %v1371_v21, %v1201_v48  ;;  %v1839_v51 = vpop.f32.mrb[11].mxu1 }
 0x26b   : > { %v1234_v52 = vmax.f32 %v1989_v50, 0.0 }
 0x26c   : > { %v1206_v53 = vpop.f32.mrb[12].mxu1 }
 0x26d   : > { %1408 = vst [vmem:[%s2634_s19 + $0x24] sm:$0xff] %v1234_v52  ;;  %v1990_v54 = vadd.f32 %v1371_v21, %v1206_v53  ;;  %v1842_v56 = vpop.f32.mrb[13].mxu1 }
 0x26f   : > { %v1235_v57 = vmax.f32 %v1990_v54, 0.0 }
 0x270   : > { %v1211_v60 = vpop.f32.mrb[14].mxu1 }
 0x271   : > { %1409 = vst [vmem:[%s2634_s19 + $0x2c] sm:$0xf] %v1235_v57  ;;  %1410 = vst [vmem:[%s2634_s19 + $0x2a] sm:$0xc0] %v1235_v57  ;;  %v1991_v62 = vadd.f32 %v1371_v21, %v1211_v60  ;;  %v1845_v0 = vpop.f32.mrb[15].mxu1 }
 0x273   : > { %v1236_v2 = vmax.f32 %v1991_v62, 0.0 }
 0x274   : > { %v1216_v5 = vpop.f32.mrb[16].mxu1 }
 0x275   : > { %1411 = vst [vmem:[%s2634_s19 + $0x32] sm:$0xff] %v1236_v2  ;;  %v1992_v7 = vadd.f32 %v1371_v21, %v1216_v5  ;;  %v1848_v8 = vpop.f32.mrb[17].mxu1 }
 0x277   : > { %v1237_v9 = vmax.f32 %v1992_v7, 0.0 }
 0x279   : > { %1412 = vst [vmem:[%s2634_s19 + $0x3a] sm:$0x3f] %v1237_v9 }
 0x27a PF: > { %s15_s18 = sadd.s32 1, %s2078_s18  }
 0x27b   : > { %p12_p4 = scmp.ge.s32.totalorder %s15_s18, 4  }
 0x27d   :  { %14 = sbr.rel (!%p12_p4) target bundleno = 1 (0x1), region = 80 }

</bundles_post_ra>
